<compile_context>
chip_gen: v7x
topology: tpu7x:2x2x1
jax: 0.10.0
libtpu: 0.0.40
codegen_flags: <defaults>
</compile_context>

<pallas_src>
import math

import jax
import jax.numpy as jnp
from jax.experimental import pallas as pl
from jax.experimental.pallas import tpu as pltpu


# ----------------------------------------------------------------------------
# Kernel
# ----------------------------------------------------------------------------
def _make_refine_kernel(tap_offsets):
    """tap_offsets: 9 static lane offsets (dy-1)*W + (dx-1), dy,dx in {0,1,2}."""
    n_taps = len(tap_offsets)

    def kernel(f_ref, pm_ref, u2t_ref, mi_ref, mp_ref,
               w0_ref, b0_ref, w1_ref, b1_ref, w2_ref, b2_ref,
               w3_ref, b3_ref, w4_ref, b4_ref,
               out_ref, slab_ref):
        # f_ref   : (1, Cin, HW)       input feature, NCHW-flat
        # pm_ref  : (1, P, Hs*Ws)      low-res features, NCHW-flat
        # u2t_ref : (Hs*Ws, HW)        kron(Uh, Uw)^T bilinear-x2 operator
        # mi_ref  : (9*Cin, HW)        im2col validity mask (zero padding)
        # mp_ref  : (9*P, HW)          im2col validity mask for P-channel convs
        # wX_ref  : (P, 9*CinX)        im2col-flattened conv weights
        # bX_ref  : (P, 1)             conv biases
        # out_ref : (1, P, HW)
        # slab_ref: (9*Cmax, HW) VMEM  im2col slab scratch
        cin0 = f_ref.shape[1]
        P = out_ref.shape[1]
        HW = out_ref.shape[2]

        def conv3x3(x, cin, w_ref, b_ref, mask_ref):
            """x: (cin, HW) f32 -> (P, HW) f32.  3x3 conv, padding=1, stride=1.

            Each tap t is x shifted along the flat spatial (lane) axis by a
            static offset, copied into its row block of the slab; out-of-image
            positions (padding + row wrap-around + never-written slab edges)
            are selected to 0 by mask_ref via jnp.where (stale-VMEM / NaN
            safe).  The conv is then a single MXU dot with K = 9*cin.
            """
            for t, off in enumerate(tap_offsets):
                r0, r1 = t * cin, (t + 1) * cin
                if off == 0:
                    slab_ref[r0:r1, :] = x
                elif off > 0:
                    slab_ref[r0:r1, 0:HW - off] = x[:, off:HW]
                else:  # off < 0
                    slab_ref[r0:r1, -off:HW] = x[:, 0:HW + off]
            slab = jnp.where(mask_ref[...] != 0.0,
                             slab_ref[0:n_taps * cin, :], 0.0)
            y = jnp.dot(w_ref[...], slab, preferred_element_type=jnp.float32)
            return y + b_ref[...]                       # (P, HW), lane-dense

        relu = lambda v: jnp.maximum(v, 0.0)

        # convFS
        x = f_ref[0].astype(jnp.float32)                        # (Cin, HW)
        s0 = conv3x3(x, cin0, w0_ref, b0_ref, mi_ref)
        # ResFS: s0 + conv2(relu(conv1(relu(s0))))
        r = conv3x3(relu(s0), P, w1_ref, b1_ref, mp_ref)
        r = conv3x3(relu(r), P, w2_ref, b2_ref, mp_ref)
        s = s0 + r
        # bilinear x2 upsample of pm as one matmul
        up = jnp.dot(pm_ref[0].astype(jnp.float32), u2t_ref[...],
                     preferred_element_type=jnp.float32)        # (P, HW)
        m0 = s + up
        # ResMM: m0 + conv2(relu(conv1(relu(m0))))
        r = conv3x3(relu(m0), P, w3_ref, b3_ref, mp_ref)
        r = conv3x3(relu(r), P, w4_ref, b4_ref, mp_ref)
        out_ref[0] = (m0 + r).astype(out_ref.dtype)

    return kernel


# ----------------------------------------------------------------------------
# Wrapper
# ----------------------------------------------------------------------------
def _bilinear_matrix(in_size, out_size):
    """(out_size, in_size) operator reproducing F.interpolate(mode='bilinear',
    align_corners=False) along one axis (half-pixel centers, edge clamp)."""
    m = [[0.0] * in_size for _ in range(out_size)]
    scale = in_size / out_size
    for i in range(out_size):
        src = max((i + 0.5) * scale - 0.5, 0.0)
        i0 = min(int(math.floor(src)), in_size - 1)
        i1 = min(i0 + 1, in_size - 1)
        l1 = src - i0
        m[i][i0] += 1.0 - l1
        m[i][i1] += l1
    return jnp.asarray(m, jnp.float32)


def _flatten_conv_weight(w):
    """(Cout, Cin, 3, 3) OIHW -> (Cout, 9*Cin), tap-major (dy,dx) then Cin,
    matching the im2col slab row order in the kernel."""
    cout, cin = w.shape[0], w.shape[1]
    return jnp.transpose(w, (0, 2, 3, 1)).reshape(cout, 9 * cin)


def refine_forward(f, pm, w0, b0, w1, b1, w2, b2, w3, b3, w4, b4):
    """Pallas forward of Refine.
    f : (N, Cin, H, W) f32, pm : (N, P, H//2, W//2) f32.
    Conv weights are PyTorch OIHW: w0 (P,Cin,3,3), w1..w4 (P,P,3,3).
    Returns m : (N, P, H, W) f32."""
    N, Cin, H, W = f.shape
    P = w0.shape[0]
    Hs, Ws = pm.shape[2], pm.shape[3]
    assert pm.shape[1] == P and (2 * Hs, 2 * Ws) == (H, W)
    HW = H * W
    Cmax = max(Cin, P)

    # ---- trace-time prep (tiny constants; no extra HBM passes on activations)
    # Per-tap lane offsets + validity masks (implements the zero padding).
    hh = jnp.repeat(jnp.arange(H), W)        # row index per flat position
    ww = jnp.tile(jnp.arange(W), H)          # col index per flat position
    tap_offsets, tap_masks = [], []
    for dy in range(3):
        for dx in range(3):
            tap_offsets.append((dy - 1) * W + (dx - 1))
            valid = ((hh + dy - 1 >= 0) & (hh + dy - 1 < H) &
                     (ww + dx - 1 >= 0) & (ww + dx - 1 < W))
            tap_masks.append(valid)
    base_mask = jnp.stack(tap_masks).astype(jnp.float32)          # (9, HW)
    mask_in = jnp.repeat(base_mask, Cin, axis=0)                  # (9*Cin, HW)
    mask_p = jnp.repeat(base_mask, P, axis=0)                     # (9*P, HW)

    # Bilinear x2 upsample (align_corners=False) as one matmul.
    uh = _bilinear_matrix(Hs, H)                                  # (H, Hs)
    uw = _bilinear_matrix(Ws, W)                                  # (W, Ws)
    u2t = jnp.kron(uh, uw).T                                      # (Hs*Ws, HW)

    # Free (contiguous) NCHW-flat views; no transposes anywhere.
    f_flat = f.reshape(N, Cin, HW)
    pm_flat = pm.reshape(N, P, Hs * Ws)

    ws = [_flatten_conv_weight(w) for w in (w0, w1, w2, w3, w4)]
    bs = [b.reshape(P, 1) for b in (b0, b1, b2, b3, b4)]

    kernel = _make_refine_kernel(tuple(tap_offsets))
    full = lambda *shape: pl.BlockSpec(shape, lambda n: (0,) * len(shape))

    out_flat = pl.pallas_call(
        kernel,
        out_shape=jax.ShapeDtypeStruct((N, P, HW), jnp.float32),
        grid_spec=pltpu.PrefetchScalarGridSpec(
            num_scalar_prefetch=0,
            grid=(N,),
            in_specs=[
                pl.BlockSpec((1, Cin, HW), lambda n: (n, 0, 0)),
                pl.BlockSpec((1, P, Hs * Ws), lambda n: (n, 0, 0)),
                full(Hs * Ws, HW),
                full(9 * Cin, HW),
                full(9 * P, HW),
                full(P, 9 * Cin), full(P, 1),
                full(P, 9 * P), full(P, 1),
                full(P, 9 * P), full(P, 1),
                full(P, 9 * P), full(P, 1),
                full(P, 9 * P), full(P, 1),
            ],
            out_specs=pl.BlockSpec((1, P, HW), lambda n: (n, 0, 0)),
            scratch_shapes=[pltpu.VMEM((9 * Cmax, HW), jnp.float32)],
        ),
        compiler_params=pltpu.CompilerParams(
            dimension_semantics=("parallel",),   # batch across TensorCores
            vmem_limit_bytes=32 * 1024 * 1024,
        ),
    )(f_flat, pm_flat, u2t, mask_in, mask_p,
      ws[0], bs[0], ws[1], bs[1], ws[2], bs[2], ws[3], bs[3], ws[4], bs[4])

    return out_flat.reshape(N, P, H, W)


# ----------------------------------------------------------------------------
# Reference + demo
# ----------------------------------------------------------------------------
def _init_conv_params(key, out_ch, in_ch, k=3):
    fan_in = in_ch * k * k
    bound = 1.0 / math.sqrt(fan_in)
    kw_key, kb_key = jax.random.split(key)
    w = jax.random.uniform(kw_key, (out_ch, in_ch, k, k), jnp.float32,
                           -bound, bound)
    b = jax.random.uniform(kb_key, (out_ch,), jnp.float32, -bound, bound)
    return w, b


def _reference(f, pm, w0, b0, w1, b1, w2, b2, w3, b3, w4, b4):
    def conv(x, w, b):
        y = jax.lax.conv_general_dilated(
            x, w, window_strides=(1, 1), padding=((1, 1), (1, 1)),
            dimension_numbers=("NCHW", "OIHW", "NCHW"),
            precision=jax.lax.Precision.HIGHEST)
        return y + b[None, :, None, None]

    relu = jax.nn.relu
    s0 = conv(f, w0, b0)
    r = conv(relu(s0), w1, b1)
    r = conv(relu(r), w2, b2)
    s = s0 + r
    n, p, hs, ws = pm.shape
    up = jax.image.resize(pm, (n, p, 2 * hs, 2 * ws), method="bilinear")
    m0 = s + up
    r = conv(relu(m0), w3, b3)
    r = conv(relu(r), w4, b4)
    return m0 + r


if __name__ == "__main__":
    N, Cin, P = 2, 4, 8          # inplanes=4, planes=8
    H = W = 16
    Hs, Ws = H // 2, W // 2

    root = jax.random.PRNGKey(0)
    kf, kpm, k0, k1, k2, k3, k4 = jax.random.split(root, 7)
    f = jax.random.normal(kf, (N, Cin, H, W), jnp.float32)
    pm = jax.random.normal(kpm, (N, P, Hs, Ws), jnp.float32)
    w0, b0 = _init_conv_params(k0, P, Cin)     # convFS
    w1, b1 = _init_conv_params(k1, P, P)       # ResFS.conv1
    w2, b2 = _init_conv_params(k2, P, P)       # ResFS.conv2
    w3, b3 = _init_conv_params(k3, P, P)       # ResMM.conv1
    w4, b4 = _init_conv_params(k4, P, P)       # ResMM.conv2

    run = jax.jit(refine_forward)
    out = run(f, pm, w0, b0, w1, b1, w2, b2, w3, b3, w4, b4)
    out = jax.block_until_ready(out)

    ref = _reference(f, pm, w0, b0, w1, b1, w2, b2, w3, b3, w4, b4)
    assert out.shape == (N, P, H, W)
    max_err = float(jnp.max(jnp.abs(out - ref)))
    assert jnp.allclose(out, ref, atol=1e-3, rtol=1e-3), max_err
    print("KERNEL_OK")
</pallas_src>

<mosaic_0001>
module attributes {stable_mosaic.version = 11 : i64} {
  func.func @kernel(%arg0: i32, %arg1: memref<1x4x256xf32, #tpu.memory_space<vmem>>, %arg2: memref<1x8x64xf32, #tpu.memory_space<vmem>>, %arg3: memref<64x256xf32, #tpu.memory_space<vmem>>, %arg4: memref<36x256xf32, #tpu.memory_space<vmem>>, %arg5: memref<72x256xf32, #tpu.memory_space<vmem>>, %arg6: memref<8x36xf32, #tpu.memory_space<vmem>>, %arg7: memref<8x1xf32, #tpu.memory_space<vmem>>, %arg8: memref<8x72xf32, #tpu.memory_space<vmem>>, %arg9: memref<8x1xf32, #tpu.memory_space<vmem>>, %arg10: memref<8x72xf32, #tpu.memory_space<vmem>>, %arg11: memref<8x1xf32, #tpu.memory_space<vmem>>, %arg12: memref<8x72xf32, #tpu.memory_space<vmem>>, %arg13: memref<8x1xf32, #tpu.memory_space<vmem>>, %arg14: memref<8x72xf32, #tpu.memory_space<vmem>>, %arg15: memref<8x1xf32, #tpu.memory_space<vmem>>, %arg16: memref<1x8x256xf32, #tpu.memory_space<vmem>>, %arg17: memref<72x256xf32, #tpu.memory_space<vmem>>) attributes {dimension_semantics = [#tpu.dimension_semantics<parallel>], iteration_bounds = array<i64: 2>, scalar_prefetch = 0 : i64, scratch_operands = 1 : i64, tpu.core_type = #tpu.core_type<tc>, window_params = [{transform_indices = @transform_0, window_bounds = array<i64: 1, 4, 256>}, {transform_indices = @transform_1, window_bounds = array<i64: 1, 8, 64>}, {pipeline_mode = #tpu.pipeline_mode<synchronous>, transform_indices = @transform_2, window_bounds = array<i64: 64, 256>}, {pipeline_mode = #tpu.pipeline_mode<synchronous>, transform_indices = @transform_3, window_bounds = array<i64: 36, 256>}, {pipeline_mode = #tpu.pipeline_mode<synchronous>, transform_indices = @transform_4, window_bounds = array<i64: 72, 256>}, {pipeline_mode = #tpu.pipeline_mode<synchronous>, transform_indices = @transform_5, window_bounds = array<i64: 8, 36>}, {pipeline_mode = #tpu.pipeline_mode<synchronous>, transform_indices = @transform_6, window_bounds = array<i64: 8, 1>}, {pipeline_mode = #tpu.pipeline_mode<synchronous>, transform_indices = @transform_7, window_bounds = array<i64: 8, 72>}, {pipeline_mode = #tpu.pipeline_mode<synchronous>, transform_indices = @transform_8, window_bounds = array<i64: 8, 1>}, {pipeline_mode = #tpu.pipeline_mode<synchronous>, transform_indices = @transform_9, window_bounds = array<i64: 8, 72>}, {pipeline_mode = #tpu.pipeline_mode<synchronous>, transform_indices = @transform_10, window_bounds = array<i64: 8, 1>}, {pipeline_mode = #tpu.pipeline_mode<synchronous>, transform_indices = @transform_11, window_bounds = array<i64: 8, 72>}, {pipeline_mode = #tpu.pipeline_mode<synchronous>, transform_indices = @transform_12, window_bounds = array<i64: 8, 1>}, {pipeline_mode = #tpu.pipeline_mode<synchronous>, transform_indices = @transform_13, window_bounds = array<i64: 8, 72>}, {pipeline_mode = #tpu.pipeline_mode<synchronous>, transform_indices = @transform_14, window_bounds = array<i64: 8, 1>}, {transform_indices = @transform_15, window_bounds = array<i64: 1, 8, 256>}]} {
    %c0 = arith.constant 0 : index
    %c0_0 = arith.constant 0 : index
    %c0_1 = arith.constant 0 : index
    %0 = vector.load %arg1[%c0, %c0_0, %c0_1] : memref<1x4x256xf32, #tpu.memory_space<vmem>>, vector<1x4x256xf32>
    %1 = vector.shape_cast %0 : vector<1x4x256xf32> to vector<4x256xf32>
    %2 = vector.extract_strided_slice %1 {offsets = [0, 0], sizes = [4, 239], strides = [1, 1]} : vector<4x256xf32> to vector<4x239xf32>
    %c0_2 = arith.constant 0 : index
    %c17 = arith.constant 17 : index
    %3 = vector.load %arg17[%c0_2, %c17] : memref<72x256xf32, #tpu.memory_space<vmem>>, vector<4x239xf32>
    tpu.vector_store %arg17[%c0_2, %c17], %2 {strides = array<i32>} : memref<72x256xf32, #tpu.memory_space<vmem>>, vector<4x239xf32>,
    %4 = vector.extract_strided_slice %1 {offsets = [0, 0], sizes = [4, 240], strides = [1, 1]} : vector<4x256xf32> to vector<4x240xf32>
    %c4 = arith.constant 4 : index
    %c16 = arith.constant 16 : index
    %5 = vector.load %arg17[%c4, %c16] : memref<72x256xf32, #tpu.memory_space<vmem>>, vector<4x240xf32>
    tpu.vector_store %arg17[%c4, %c16], %4 {strides = array<i32>} : memref<72x256xf32, #tpu.memory_space<vmem>>, vector<4x240xf32>,
    %6 = vector.extract_strided_slice %1 {offsets = [0, 0], sizes = [4, 241], strides = [1, 1]} : vector<4x256xf32> to vector<4x241xf32>
    %c8 = arith.constant 8 : index
    %c15 = arith.constant 15 : index
    %7 = vector.load %arg17[%c8, %c15] : memref<72x256xf32, #tpu.memory_space<vmem>>, vector<4x241xf32>
    tpu.vector_store %arg17[%c8, %c15], %6 {strides = array<i32>} : memref<72x256xf32, #tpu.memory_space<vmem>>, vector<4x241xf32>,
    %8 = vector.extract_strided_slice %1 {offsets = [0, 0], sizes = [4, 255], strides = [1, 1]} : vector<4x256xf32> to vector<4x255xf32>
    %c12 = arith.constant 12 : index
    %c1 = arith.constant 1 : index
    %9 = vector.load %arg17[%c12, %c1] : memref<72x256xf32, #tpu.memory_space<vmem>>, vector<4x255xf32>
    tpu.vector_store %arg17[%c12, %c1], %8 {strides = array<i32>} : memref<72x256xf32, #tpu.memory_space<vmem>>, vector<4x255xf32>,
    %c16_3 = arith.constant 16 : index
    %c0_4 = arith.constant 0 : index
    %10 = vector.load %arg17[%c16_3, %c0_4] : memref<72x256xf32, #tpu.memory_space<vmem>>, vector<4x256xf32>
    tpu.vector_store %arg17[%c16_3, %c0_4], %1 {strides = array<i32>} : memref<72x256xf32, #tpu.memory_space<vmem>>, vector<4x256xf32>,
    %11 = vector.extract_strided_slice %1 {offsets = [0, 1], sizes = [4, 255], strides = [1, 1]} : vector<4x256xf32> to vector<4x255xf32>
    %c20 = arith.constant 20 : index
    %c0_5 = arith.constant 0 : index
    %12 = vector.load %arg17[%c20, %c0_5] : memref<72x256xf32, #tpu.memory_space<vmem>>, vector<4x255xf32>
    tpu.vector_store %arg17[%c20, %c0_5], %11 {strides = array<i32>} : memref<72x256xf32, #tpu.memory_space<vmem>>, vector<4x255xf32>,
    %13 = vector.extract_strided_slice %1 {offsets = [0, 15], sizes = [4, 241], strides = [1, 1]} : vector<4x256xf32> to vector<4x241xf32>
    %c24 = arith.constant 24 : index
    %c0_6 = arith.constant 0 : index
    %14 = vector.load %arg17[%c24, %c0_6] : memref<72x256xf32, #tpu.memory_space<vmem>>, vector<4x241xf32>
    tpu.vector_store %arg17[%c24, %c0_6], %13 {strides = array<i32>} : memref<72x256xf32, #tpu.memory_space<vmem>>, vector<4x241xf32>,
    %15 = vector.extract_strided_slice %1 {offsets = [0, 16], sizes = [4, 240], strides = [1, 1]} : vector<4x256xf32> to vector<4x240xf32>
    %c28 = arith.constant 28 : index
    %c0_7 = arith.constant 0 : index
    %16 = vector.load %arg17[%c28, %c0_7] : memref<72x256xf32, #tpu.memory_space<vmem>>, vector<4x240xf32>
    tpu.vector_store %arg17[%c28, %c0_7], %15 {strides = array<i32>} : memref<72x256xf32, #tpu.memory_space<vmem>>, vector<4x240xf32>,
    %17 = vector.extract_strided_slice %1 {offsets = [0, 17], sizes = [4, 239], strides = [1, 1]} : vector<4x256xf32> to vector<4x239xf32>
    %c32 = arith.constant 32 : index
    %c0_8 = arith.constant 0 : index
    %18 = vector.load %arg17[%c32, %c0_8] : memref<72x256xf32, #tpu.memory_space<vmem>>, vector<4x239xf32>
    tpu.vector_store %arg17[%c32, %c0_8], %17 {strides = array<i32>} : memref<72x256xf32, #tpu.memory_space<vmem>>, vector<4x239xf32>,
    %c0_9 = arith.constant 0 : index
    %c0_10 = arith.constant 0 : index
    %19 = vector.load %arg4[%c0_9, %c0_10] : memref<36x256xf32, #tpu.memory_space<vmem>>, vector<36x256xf32>
    %cst = arith.constant 0.000000e+00 : f32
    %20 = vector.broadcast %cst : f32 to vector<36x256xf32>
    %21 = arith.cmpf one, %19, %20 : vector<36x256xf32>
    %c0_11 = arith.constant 0 : index
    %c0_12 = arith.constant 0 : index
    %22 = vector.load %arg17[%c0_11, %c0_12] : memref<72x256xf32, #tpu.memory_space<vmem>>, vector<36x256xf32>
    %cst_13 = arith.constant 0.000000e+00 : f32
    %23 = vector.broadcast %cst_13 : f32 to vector<36x256xf32>
    %24 = arith.select %21, %22, %23 : vector<36x256xi1>, vector<36x256xf32>
    %c0_14 = arith.constant 0 : index
    %c0_15 = arith.constant 0 : index
    %25 = vector.load %arg6[%c0_14, %c0_15] : memref<8x36xf32, #tpu.memory_space<vmem>>, vector<8x36xf32>
    %cst_16 = arith.constant dense<0.000000e+00> : vector<8x256xf32>
    %26 = tpu.matmul %25, %24, %cst_16 {dimension_numbers = #tpu.dot_dimension_numbers<[1], [0], [0], [1], [0, 0, 1, 1], [], []>} : vector<8x36xf32>, vector<36x256xf32>, vector<8x256xf32> -> vector<8x256xf32>
    %c0_17 = arith.constant 0 : index
    %c0_18 = arith.constant 0 : index
    %27 = vector.load %arg7[%c0_17, %c0_18] : memref<8x1xf32, #tpu.memory_space<vmem>>, vector<8x1xf32>
    %28 = vector.broadcast %27 : vector<8x1xf32> to vector<8x256xf32>
    %29 = arith.addf %26, %28 : vector<8x256xf32>
    %cst_19 = arith.constant 0.000000e+00 : f32
    %30 = vector.broadcast %cst_19 : f32 to vector<8x256xf32>
    %31 = arith.maximumf %29, %30 : vector<8x256xf32>
    %32 = vector.extract_strided_slice %31 {offsets = [0, 0], sizes = [8, 239], strides = [1, 1]} : vector<8x256xf32> to vector<8x239xf32>
    %c0_20 = arith.constant 0 : index
    %c17_21 = arith.constant 17 : index
    %33 = vector.load %arg17[%c0_20, %c17_21] : memref<72x256xf32, #tpu.memory_space<vmem>>, vector<8x239xf32>
    tpu.vector_store %arg17[%c0_20, %c17_21], %32 {strides = array<i32>} : memref<72x256xf32, #tpu.memory_space<vmem>>, vector<8x239xf32>,
    %34 = vector.extract_strided_slice %31 {offsets = [0, 0], sizes = [8, 240], strides = [1, 1]} : vector<8x256xf32> to vector<8x240xf32>
    %c8_22 = arith.constant 8 : index
    %c16_23 = arith.constant 16 : index
    %35 = vector.load %arg17[%c8_22, %c16_23] : memref<72x256xf32, #tpu.memory_space<vmem>>, vector<8x240xf32>
    tpu.vector_store %arg17[%c8_22, %c16_23], %34 {strides = array<i32>} : memref<72x256xf32, #tpu.memory_space<vmem>>, vector<8x240xf32>,
    %36 = vector.extract_strided_slice %31 {offsets = [0, 0], sizes = [8, 241], strides = [1, 1]} : vector<8x256xf32> to vector<8x241xf32>
    %c16_24 = arith.constant 16 : index
    %c15_25 = arith.constant 15 : index
    %37 = vector.load %arg17[%c16_24, %c15_25] : memref<72x256xf32, #tpu.memory_space<vmem>>, vector<8x241xf32>
    tpu.vector_store %arg17[%c16_24, %c15_25], %36 {strides = array<i32>} : memref<72x256xf32, #tpu.memory_space<vmem>>, vector<8x241xf32>,
    %38 = vector.extract_strided_slice %31 {offsets = [0, 0], sizes = [8, 255], strides = [1, 1]} : vector<8x256xf32> to vector<8x255xf32>
    %c24_26 = arith.constant 24 : index
    %c1_27 = arith.constant 1 : index
    %39 = vector.load %arg17[%c24_26, %c1_27] : memref<72x256xf32, #tpu.memory_space<vmem>>, vector<8x255xf32>
    tpu.vector_store %arg17[%c24_26, %c1_27], %38 {strides = array<i32>} : memref<72x256xf32, #tpu.memory_space<vmem>>, vector<8x255xf32>,
    %c32_28 = arith.constant 32 : index
    %c0_29 = arith.constant 0 : index
    %40 = vector.load %arg17[%c32_28, %c0_29] : memref<72x256xf32, #tpu.memory_space<vmem>>, vector<8x256xf32>
    tpu.vector_store %arg17[%c32_28, %c0_29], %31 {strides = array<i32>} : memref<72x256xf32, #tpu.memory_space<vmem>>, vector<8x256xf32>,
    %41 = vector.extract_strided_slice %31 {offsets = [0, 1], sizes = [8, 255], strides = [1, 1]} : vector<8x256xf32> to vector<8x255xf32>
    %c40 = arith.constant 40 : index
    %c0_30 = arith.constant 0 : index
    %42 = vector.load %arg17[%c40, %c0_30] : memref<72x256xf32, #tpu.memory_space<vmem>>, vector<8x255xf32>
    tpu.vector_store %arg17[%c40, %c0_30], %41 {strides = array<i32>} : memref<72x256xf32, #tpu.memory_space<vmem>>, vector<8x255xf32>,
    %43 = vector.extract_strided_slice %31 {offsets = [0, 15], sizes = [8, 241], strides = [1, 1]} : vector<8x256xf32> to vector<8x241xf32>
    %c48 = arith.constant 48 : index
    %c0_31 = arith.constant 0 : index
    %44 = vector.load %arg17[%c48, %c0_31] : memref<72x256xf32, #tpu.memory_space<vmem>>, vector<8x241xf32>
    tpu.vector_store %arg17[%c48, %c0_31], %43 {strides = array<i32>} : memref<72x256xf32, #tpu.memory_space<vmem>>, vector<8x241xf32>,
    %45 = vector.extract_strided_slice %31 {offsets = [0, 16], sizes = [8, 240], strides = [1, 1]} : vector<8x256xf32> to vector<8x240xf32>
    %c56 = arith.constant 56 : index
    %c0_32 = arith.constant 0 : index
    %46 = vector.load %arg17[%c56, %c0_32] : memref<72x256xf32, #tpu.memory_space<vmem>>, vector<8x240xf32>
    tpu.vector_store %arg17[%c56, %c0_32], %45 {strides = array<i32>} : memref<72x256xf32, #tpu.memory_space<vmem>>, vector<8x240xf32>,
    %47 = vector.extract_strided_slice %31 {offsets = [0, 17], sizes = [8, 239], strides = [1, 1]} : vector<8x256xf32> to vector<8x239xf32>
    %c64 = arith.constant 64 : index
    %c0_33 = arith.constant 0 : index
    %48 = vector.load %arg17[%c64, %c0_33] : memref<72x256xf32, #tpu.memory_space<vmem>>, vector<8x239xf32>
    tpu.vector_store %arg17[%c64, %c0_33], %47 {strides = array<i32>} : memref<72x256xf32, #tpu.memory_space<vmem>>, vector<8x239xf32>,
    %c0_34 = arith.constant 0 : index
    %c0_35 = arith.constant 0 : index
    %49 = vector.load %arg5[%c0_34, %c0_35] : memref<72x256xf32, #tpu.memory_space<vmem>>, vector<72x256xf32>
    %cst_36 = arith.constant 0.000000e+00 : f32
    %50 = vector.broadcast %cst_36 : f32 to vector<72x256xf32>
    %51 = arith.cmpf one, %49, %50 : vector<72x256xf32>
    %c0_37 = arith.constant 0 : index
    %c0_38 = arith.constant 0 : index
    %52 = vector.load %arg17[%c0_37, %c0_38] : memref<72x256xf32, #tpu.memory_space<vmem>>, vector<72x256xf32>
    %cst_39 = arith.constant 0.000000e+00 : f32
    %53 = vector.broadcast %cst_39 : f32 to vector<72x256xf32>
    %54 = arith.select %51, %52, %53 : vector<72x256xi1>, vector<72x256xf32>
    %c0_40 = arith.constant 0 : index
    %c0_41 = arith.constant 0 : index
    %55 = vector.load %arg8[%c0_40, %c0_41] : memref<8x72xf32, #tpu.memory_space<vmem>>, vector<8x72xf32>
    %cst_42 = arith.constant dense<0.000000e+00> : vector<8x256xf32>
    %56 = tpu.matmul %55, %54, %cst_42 {dimension_numbers = #tpu.dot_dimension_numbers<[1], [0], [0], [1], [0, 0, 1, 1], [], []>} : vector<8x72xf32>, vector<72x256xf32>, vector<8x256xf32> -> vector<8x256xf32>
    %c0_43 = arith.constant 0 : index
    %c0_44 = arith.constant 0 : index
    %57 = vector.load %arg9[%c0_43, %c0_44] : memref<8x1xf32, #tpu.memory_space<vmem>>, vector<8x1xf32>
    %58 = vector.broadcast %57 : vector<8x1xf32> to vector<8x256xf32>
    %59 = arith.addf %56, %58 : vector<8x256xf32>
    %cst_45 = arith.constant 0.000000e+00 : f32
    %60 = vector.broadcast %cst_45 : f32 to vector<8x256xf32>
    %61 = arith.maximumf %59, %60 : vector<8x256xf32>
    %62 = vector.extract_strided_slice %61 {offsets = [0, 0], sizes = [8, 239], strides = [1, 1]} : vector<8x256xf32> to vector<8x239xf32>
    %c0_46 = arith.constant 0 : index
    %c17_47 = arith.constant 17 : index
    %63 = vector.load %arg17[%c0_46, %c17_47] : memref<72x256xf32, #tpu.memory_space<vmem>>, vector<8x239xf32>
    tpu.vector_store %arg17[%c0_46, %c17_47], %62 {strides = array<i32>} : memref<72x256xf32, #tpu.memory_space<vmem>>, vector<8x239xf32>,
    %64 = vector.extract_strided_slice %61 {offsets = [0, 0], sizes = [8, 240], strides = [1, 1]} : vector<8x256xf32> to vector<8x240xf32>
    %c8_48 = arith.constant 8 : index
    %c16_49 = arith.constant 16 : index
    %65 = vector.load %arg17[%c8_48, %c16_49] : memref<72x256xf32, #tpu.memory_space<vmem>>, vector<8x240xf32>
    tpu.vector_store %arg17[%c8_48, %c16_49], %64 {strides = array<i32>} : memref<72x256xf32, #tpu.memory_space<vmem>>, vector<8x240xf32>,
    %66 = vector.extract_strided_slice %61 {offsets = [0, 0], sizes = [8, 241], strides = [1, 1]} : vector<8x256xf32> to vector<8x241xf32>
    %c16_50 = arith.constant 16 : index
    %c15_51 = arith.constant 15 : index
    %67 = vector.load %arg17[%c16_50, %c15_51] : memref<72x256xf32, #tpu.memory_space<vmem>>, vector<8x241xf32>
    tpu.vector_store %arg17[%c16_50, %c15_51], %66 {strides = array<i32>} : memref<72x256xf32, #tpu.memory_space<vmem>>, vector<8x241xf32>,
    %68 = vector.extract_strided_slice %61 {offsets = [0, 0], sizes = [8, 255], strides = [1, 1]} : vector<8x256xf32> to vector<8x255xf32>
    %c24_52 = arith.constant 24 : index
    %c1_53 = arith.constant 1 : index
    %69 = vector.load %arg17[%c24_52, %c1_53] : memref<72x256xf32, #tpu.memory_space<vmem>>, vector<8x255xf32>
    tpu.vector_store %arg17[%c24_52, %c1_53], %68 {strides = array<i32>} : memref<72x256xf32, #tpu.memory_space<vmem>>, vector<8x255xf32>,
    %c32_54 = arith.constant 32 : index
    %c0_55 = arith.constant 0 : index
    %70 = vector.load %arg17[%c32_54, %c0_55] : memref<72x256xf32, #tpu.memory_space<vmem>>, vector<8x256xf32>
    tpu.vector_store %arg17[%c32_54, %c0_55], %61 {strides = array<i32>} : memref<72x256xf32, #tpu.memory_space<vmem>>, vector<8x256xf32>,
    %71 = vector.extract_strided_slice %61 {offsets = [0, 1], sizes = [8, 255], strides = [1, 1]} : vector<8x256xf32> to vector<8x255xf32>
    %c40_56 = arith.constant 40 : index
    %c0_57 = arith.constant 0 : index
    %72 = vector.load %arg17[%c40_56, %c0_57] : memref<72x256xf32, #tpu.memory_space<vmem>>, vector<8x255xf32>
    tpu.vector_store %arg17[%c40_56, %c0_57], %71 {strides = array<i32>} : memref<72x256xf32, #tpu.memory_space<vmem>>, vector<8x255xf32>,
    %73 = vector.extract_strided_slice %61 {offsets = [0, 15], sizes = [8, 241], strides = [1, 1]} : vector<8x256xf32> to vector<8x241xf32>
    %c48_58 = arith.constant 48 : index
    %c0_59 = arith.constant 0 : index
    %74 = vector.load %arg17[%c48_58, %c0_59] : memref<72x256xf32, #tpu.memory_space<vmem>>, vector<8x241xf32>
    tpu.vector_store %arg17[%c48_58, %c0_59], %73 {strides = array<i32>} : memref<72x256xf32, #tpu.memory_space<vmem>>, vector<8x241xf32>,
    %75 = vector.extract_strided_slice %61 {offsets = [0, 16], sizes = [8, 240], strides = [1, 1]} : vector<8x256xf32> to vector<8x240xf32>
    %c56_60 = arith.constant 56 : index
    %c0_61 = arith.constant 0 : index
    %76 = vector.load %arg17[%c56_60, %c0_61] : memref<72x256xf32, #tpu.memory_space<vmem>>, vector<8x240xf32>
    tpu.vector_store %arg17[%c56_60, %c0_61], %75 {strides = array<i32>} : memref<72x256xf32, #tpu.memory_space<vmem>>, vector<8x240xf32>,
    %77 = vector.extract_strided_slice %61 {offsets = [0, 17], sizes = [8, 239], strides = [1, 1]} : vector<8x256xf32> to vector<8x239xf32>
    %c64_62 = arith.constant 64 : index
    %c0_63 = arith.constant 0 : index
    %78 = vector.load %arg17[%c64_62, %c0_63] : memref<72x256xf32, #tpu.memory_space<vmem>>, vector<8x239xf32>
    tpu.vector_store %arg17[%c64_62, %c0_63], %77 {strides = array<i32>} : memref<72x256xf32, #tpu.memory_space<vmem>>, vector<8x239xf32>,
    %c0_64 = arith.constant 0 : index
    %c0_65 = arith.constant 0 : index
    %79 = vector.load %arg5[%c0_64, %c0_65] : memref<72x256xf32, #tpu.memory_space<vmem>>, vector<72x256xf32>
    %cst_66 = arith.constant 0.000000e+00 : f32
    %80 = vector.broadcast %cst_66 : f32 to vector<72x256xf32>
    %81 = arith.cmpf one, %79, %80 : vector<72x256xf32>
    %c0_67 = arith.constant 0 : index
    %c0_68 = arith.constant 0 : index
    %82 = vector.load %arg17[%c0_67, %c0_68] : memref<72x256xf32, #tpu.memory_space<vmem>>, vector<72x256xf32>
    %cst_69 = arith.constant 0.000000e+00 : f32
    %83 = vector.broadcast %cst_69 : f32 to vector<72x256xf32>
    %84 = arith.select %81, %82, %83 : vector<72x256xi1>, vector<72x256xf32>
    %c0_70 = arith.constant 0 : index
    %c0_71 = arith.constant 0 : index
    %85 = vector.load %arg10[%c0_70, %c0_71] : memref<8x72xf32, #tpu.memory_space<vmem>>, vector<8x72xf32>
    %cst_72 = arith.constant dense<0.000000e+00> : vector<8x256xf32>
    %86 = tpu.matmul %85, %84, %cst_72 {dimension_numbers = #tpu.dot_dimension_numbers<[1], [0], [0], [1], [0, 0, 1, 1], [], []>} : vector<8x72xf32>, vector<72x256xf32>, vector<8x256xf32> -> vector<8x256xf32>
    %c0_73 = arith.constant 0 : index
    %c0_74 = arith.constant 0 : index
    %87 = vector.load %arg11[%c0_73, %c0_74] : memref<8x1xf32, #tpu.memory_space<vmem>>, vector<8x1xf32>
    %88 = vector.broadcast %87 : vector<8x1xf32> to vector<8x256xf32>
    %89 = arith.addf %86, %88 : vector<8x256xf32>
    %90 = arith.addf %29, %89 : vector<8x256xf32>
    %c0_75 = arith.constant 0 : index
    %c0_76 = arith.constant 0 : index
    %c0_77 = arith.constant 0 : index
    %91 = vector.load %arg2[%c0_75, %c0_76, %c0_77] : memref<1x8x64xf32, #tpu.memory_space<vmem>>, vector<1x8x64xf32>
    %92 = vector.shape_cast %91 : vector<1x8x64xf32> to vector<8x64xf32>
    %c0_78 = arith.constant 0 : index
    %c0_79 = arith.constant 0 : index
    %93 = vector.load %arg3[%c0_78, %c0_79] : memref<64x256xf32, #tpu.memory_space<vmem>>, vector<64x256xf32>
    %cst_80 = arith.constant dense<0.000000e+00> : vector<8x256xf32>
    %94 = tpu.matmul %92, %93, %cst_80 {dimension_numbers = #tpu.dot_dimension_numbers<[1], [0], [0], [1], [0, 0, 1, 1], [], []>} : vector<8x64xf32>, vector<64x256xf32>, vector<8x256xf32> -> vector<8x256xf32>
    %95 = arith.addf %90, %94 : vector<8x256xf32>
    %cst_81 = arith.constant 0.000000e+00 : f32
    %96 = vector.broadcast %cst_81 : f32 to vector<8x256xf32>
    %97 = arith.maximumf %95, %96 : vector<8x256xf32>
    %98 = vector.extract_strided_slice %97 {offsets = [0, 0], sizes = [8, 239], strides = [1, 1]} : vector<8x256xf32> to vector<8x239xf32>
    %c0_82 = arith.constant 0 : index
    %c17_83 = arith.constant 17 : index
    %99 = vector.load %arg17[%c0_82, %c17_83] : memref<72x256xf32, #tpu.memory_space<vmem>>, vector<8x239xf32>
    tpu.vector_store %arg17[%c0_82, %c17_83], %98 {strides = array<i32>} : memref<72x256xf32, #tpu.memory_space<vmem>>, vector<8x239xf32>,
    %100 = vector.extract_strided_slice %97 {offsets = [0, 0], sizes = [8, 240], strides = [1, 1]} : vector<8x256xf32> to vector<8x240xf32>
    %c8_84 = arith.constant 8 : index
    %c16_85 = arith.constant 16 : index
    %101 = vector.load %arg17[%c8_84, %c16_85] : memref<72x256xf32, #tpu.memory_space<vmem>>, vector<8x240xf32>
    tpu.vector_store %arg17[%c8_84, %c16_85], %100 {strides = array<i32>} : memref<72x256xf32, #tpu.memory_space<vmem>>, vector<8x240xf32>,
    %102 = vector.extract_strided_slice %97 {offsets = [0, 0], sizes = [8, 241], strides = [1, 1]} : vector<8x256xf32> to vector<8x241xf32>
    %c16_86 = arith.constant 16 : index
    %c15_87 = arith.constant 15 : index
    %103 = vector.load %arg17[%c16_86, %c15_87] : memref<72x256xf32, #tpu.memory_space<vmem>>, vector<8x241xf32>
    tpu.vector_store %arg17[%c16_86, %c15_87], %102 {strides = array<i32>} : memref<72x256xf32, #tpu.memory_space<vmem>>, vector<8x241xf32>,
    %104 = vector.extract_strided_slice %97 {offsets = [0, 0], sizes = [8, 255], strides = [1, 1]} : vector<8x256xf32> to vector<8x255xf32>
    %c24_88 = arith.constant 24 : index
    %c1_89 = arith.constant 1 : index
    %105 = vector.load %arg17[%c24_88, %c1_89] : memref<72x256xf32, #tpu.memory_space<vmem>>, vector<8x255xf32>
    tpu.vector_store %arg17[%c24_88, %c1_89], %104 {strides = array<i32>} : memref<72x256xf32, #tpu.memory_space<vmem>>, vector<8x255xf32>,
    %c32_90 = arith.constant 32 : index
    %c0_91 = arith.constant 0 : index
    %106 = vector.load %arg17[%c32_90, %c0_91] : memref<72x256xf32, #tpu.memory_space<vmem>>, vector<8x256xf32>
    tpu.vector_store %arg17[%c32_90, %c0_91], %97 {strides = array<i32>} : memref<72x256xf32, #tpu.memory_space<vmem>>, vector<8x256xf32>,
    %107 = vector.extract_strided_slice %97 {offsets = [0, 1], sizes = [8, 255], strides = [1, 1]} : vector<8x256xf32> to vector<8x255xf32>
    %c40_92 = arith.constant 40 : index
    %c0_93 = arith.constant 0 : index
    %108 = vector.load %arg17[%c40_92, %c0_93] : memref<72x256xf32, #tpu.memory_space<vmem>>, vector<8x255xf32>
    tpu.vector_store %arg17[%c40_92, %c0_93], %107 {strides = array<i32>} : memref<72x256xf32, #tpu.memory_space<vmem>>, vector<8x255xf32>,
    %109 = vector.extract_strided_slice %97 {offsets = [0, 15], sizes = [8, 241], strides = [1, 1]} : vector<8x256xf32> to vector<8x241xf32>
    %c48_94 = arith.constant 48 : index
    %c0_95 = arith.constant 0 : index
    %110 = vector.load %arg17[%c48_94, %c0_95] : memref<72x256xf32, #tpu.memory_space<vmem>>, vector<8x241xf32>
    tpu.vector_store %arg17[%c48_94, %c0_95], %109 {strides = array<i32>} : memref<72x256xf32, #tpu.memory_space<vmem>>, vector<8x241xf32>,
    %111 = vector.extract_strided_slice %97 {offsets = [0, 16], sizes = [8, 240], strides = [1, 1]} : vector<8x256xf32> to vector<8x240xf32>
    %c56_96 = arith.constant 56 : index
    %c0_97 = arith.constant 0 : index
    %112 = vector.load %arg17[%c56_96, %c0_97] : memref<72x256xf32, #tpu.memory_space<vmem>>, vector<8x240xf32>
    tpu.vector_store %arg17[%c56_96, %c0_97], %111 {strides = array<i32>} : memref<72x256xf32, #tpu.memory_space<vmem>>, vector<8x240xf32>,
    %113 = vector.extract_strided_slice %97 {offsets = [0, 17], sizes = [8, 239], strides = [1, 1]} : vector<8x256xf32> to vector<8x239xf32>
    %c64_98 = arith.constant 64 : index
    %c0_99 = arith.constant 0 : index
    %114 = vector.load %arg17[%c64_98, %c0_99] : memref<72x256xf32, #tpu.memory_space<vmem>>, vector<8x239xf32>
    tpu.vector_store %arg17[%c64_98, %c0_99], %113 {strides = array<i32>} : memref<72x256xf32, #tpu.memory_space<vmem>>, vector<8x239xf32>,
    %c0_100 = arith.constant 0 : index
    %c0_101 = arith.constant 0 : index
    %115 = vector.load %arg5[%c0_100, %c0_101] : memref<72x256xf32, #tpu.memory_space<vmem>>, vector<72x256xf32>
    %cst_102 = arith.constant 0.000000e+00 : f32
    %116 = vector.broadcast %cst_102 : f32 to vector<72x256xf32>
    %117 = arith.cmpf one, %115, %116 : vector<72x256xf32>
    %c0_103 = arith.constant 0 : index
    %c0_104 = arith.constant 0 : index
    %118 = vector.load %arg17[%c0_103, %c0_104] : memref<72x256xf32, #tpu.memory_space<vmem>>, vector<72x256xf32>
    %cst_105 = arith.constant 0.000000e+00 : f32
    %119 = vector.broadcast %cst_105 : f32 to vector<72x256xf32>
    %120 = arith.select %117, %118, %119 : vector<72x256xi1>, vector<72x256xf32>
    %c0_106 = arith.constant 0 : index
    %c0_107 = arith.constant 0 : index
    %121 = vector.load %arg12[%c0_106, %c0_107] : memref<8x72xf32, #tpu.memory_space<vmem>>, vector<8x72xf32>
    %cst_108 = arith.constant dense<0.000000e+00> : vector<8x256xf32>
    %122 = tpu.matmul %121, %120, %cst_108 {dimension_numbers = #tpu.dot_dimension_numbers<[1], [0], [0], [1], [0, 0, 1, 1], [], []>} : vector<8x72xf32>, vector<72x256xf32>, vector<8x256xf32> -> vector<8x256xf32>
    %c0_109 = arith.constant 0 : index
    %c0_110 = arith.constant 0 : index
    %123 = vector.load %arg13[%c0_109, %c0_110] : memref<8x1xf32, #tpu.memory_space<vmem>>, vector<8x1xf32>
    %124 = vector.broadcast %123 : vector<8x1xf32> to vector<8x256xf32>
    %125 = arith.addf %122, %124 : vector<8x256xf32>
    %cst_111 = arith.constant 0.000000e+00 : f32
    %126 = vector.broadcast %cst_111 : f32 to vector<8x256xf32>
    %127 = arith.maximumf %125, %126 : vector<8x256xf32>
    %128 = vector.extract_strided_slice %127 {offsets = [0, 0], sizes = [8, 239], strides = [1, 1]} : vector<8x256xf32> to vector<8x239xf32>
    %c0_112 = arith.constant 0 : index
    %c17_113 = arith.constant 17 : index
    %129 = vector.load %arg17[%c0_112, %c17_113] : memref<72x256xf32, #tpu.memory_space<vmem>>, vector<8x239xf32>
    tpu.vector_store %arg17[%c0_112, %c17_113], %128 {strides = array<i32>} : memref<72x256xf32, #tpu.memory_space<vmem>>, vector<8x239xf32>,
    %130 = vector.extract_strided_slice %127 {offsets = [0, 0], sizes = [8, 240], strides = [1, 1]} : vector<8x256xf32> to vector<8x240xf32>
    %c8_114 = arith.constant 8 : index
    %c16_115 = arith.constant 16 : index
    %131 = vector.load %arg17[%c8_114, %c16_115] : memref<72x256xf32, #tpu.memory_space<vmem>>, vector<8x240xf32>
    tpu.vector_store %arg17[%c8_114, %c16_115], %130 {strides = array<i32>} : memref<72x256xf32, #tpu.memory_space<vmem>>, vector<8x240xf32>,
    %132 = vector.extract_strided_slice %127 {offsets = [0, 0], sizes = [8, 241], strides = [1, 1]} : vector<8x256xf32> to vector<8x241xf32>
    %c16_116 = arith.constant 16 : index
    %c15_117 = arith.constant 15 : index
    %133 = vector.load %arg17[%c16_116, %c15_117] : memref<72x256xf32, #tpu.memory_space<vmem>>, vector<8x241xf32>
    tpu.vector_store %arg17[%c16_116, %c15_117], %132 {strides = array<i32>} : memref<72x256xf32, #tpu.memory_space<vmem>>, vector<8x241xf32>,
    %134 = vector.extract_strided_slice %127 {offsets = [0, 0], sizes = [8, 255], strides = [1, 1]} : vector<8x256xf32> to vector<8x255xf32>
    %c24_118 = arith.constant 24 : index
    %c1_119 = arith.constant 1 : index
    %135 = vector.load %arg17[%c24_118, %c1_119] : memref<72x256xf32, #tpu.memory_space<vmem>>, vector<8x255xf32>
    tpu.vector_store %arg17[%c24_118, %c1_119], %134 {strides = array<i32>} : memref<72x256xf32, #tpu.memory_space<vmem>>, vector<8x255xf32>,
    %c32_120 = arith.constant 32 : index
    %c0_121 = arith.constant 0 : index
    %136 = vector.load %arg17[%c32_120, %c0_121] : memref<72x256xf32, #tpu.memory_space<vmem>>, vector<8x256xf32>
    tpu.vector_store %arg17[%c32_120, %c0_121], %127 {strides = array<i32>} : memref<72x256xf32, #tpu.memory_space<vmem>>, vector<8x256xf32>,
    %137 = vector.extract_strided_slice %127 {offsets = [0, 1], sizes = [8, 255], strides = [1, 1]} : vector<8x256xf32> to vector<8x255xf32>
    %c40_122 = arith.constant 40 : index
    %c0_123 = arith.constant 0 : index
    %138 = vector.load %arg17[%c40_122, %c0_123] : memref<72x256xf32, #tpu.memory_space<vmem>>, vector<8x255xf32>
    tpu.vector_store %arg17[%c40_122, %c0_123], %137 {strides = array<i32>} : memref<72x256xf32, #tpu.memory_space<vmem>>, vector<8x255xf32>,
    %139 = vector.extract_strided_slice %127 {offsets = [0, 15], sizes = [8, 241], strides = [1, 1]} : vector<8x256xf32> to vector<8x241xf32>
    %c48_124 = arith.constant 48 : index
    %c0_125 = arith.constant 0 : index
    %140 = vector.load %arg17[%c48_124, %c0_125] : memref<72x256xf32, #tpu.memory_space<vmem>>, vector<8x241xf32>
    tpu.vector_store %arg17[%c48_124, %c0_125], %139 {strides = array<i32>} : memref<72x256xf32, #tpu.memory_space<vmem>>, vector<8x241xf32>,
    %141 = vector.extract_strided_slice %127 {offsets = [0, 16], sizes = [8, 240], strides = [1, 1]} : vector<8x256xf32> to vector<8x240xf32>
    %c56_126 = arith.constant 56 : index
    %c0_127 = arith.constant 0 : index
    %142 = vector.load %arg17[%c56_126, %c0_127] : memref<72x256xf32, #tpu.memory_space<vmem>>, vector<8x240xf32>
    tpu.vector_store %arg17[%c56_126, %c0_127], %141 {strides = array<i32>} : memref<72x256xf32, #tpu.memory_space<vmem>>, vector<8x240xf32>,
    %143 = vector.extract_strided_slice %127 {offsets = [0, 17], sizes = [8, 239], strides = [1, 1]} : vector<8x256xf32> to vector<8x239xf32>
    %c64_128 = arith.constant 64 : index
    %c0_129 = arith.constant 0 : index
    %144 = vector.load %arg17[%c64_128, %c0_129] : memref<72x256xf32, #tpu.memory_space<vmem>>, vector<8x239xf32>
    tpu.vector_store %arg17[%c64_128, %c0_129], %143 {strides = array<i32>} : memref<72x256xf32, #tpu.memory_space<vmem>>, vector<8x239xf32>,
    %c0_130 = arith.constant 0 : index
    %c0_131 = arith.constant 0 : index
    %145 = vector.load %arg5[%c0_130, %c0_131] : memref<72x256xf32, #tpu.memory_space<vmem>>, vector<72x256xf32>
    %cst_132 = arith.constant 0.000000e+00 : f32
    %146 = vector.broadcast %cst_132 : f32 to vector<72x256xf32>
    %147 = arith.cmpf one, %145, %146 : vector<72x256xf32>
    %c0_133 = arith.constant 0 : index
    %c0_134 = arith.constant 0 : index
    %148 = vector.load %arg17[%c0_133, %c0_134] : memref<72x256xf32, #tpu.memory_space<vmem>>, vector<72x256xf32>
    %cst_135 = arith.constant 0.000000e+00 : f32
    %149 = vector.broadcast %cst_135 : f32 to vector<72x256xf32>
    %150 = arith.select %147, %148, %149 : vector<72x256xi1>, vector<72x256xf32>
    %c0_136 = arith.constant 0 : index
    %c0_137 = arith.constant 0 : index
    %151 = vector.load %arg14[%c0_136, %c0_137] : memref<8x72xf32, #tpu.memory_space<vmem>>, vector<8x72xf32>
    %cst_138 = arith.constant dense<0.000000e+00> : vector<8x256xf32>
    %152 = tpu.matmul %151, %150, %cst_138 {dimension_numbers = #tpu.dot_dimension_numbers<[1], [0], [0], [1], [0, 0, 1, 1], [], []>} : vector<8x72xf32>, vector<72x256xf32>, vector<8x256xf32> -> vector<8x256xf32>
    %c0_139 = arith.constant 0 : index
    %c0_140 = arith.constant 0 : index
    %153 = vector.load %arg15[%c0_139, %c0_140] : memref<8x1xf32, #tpu.memory_space<vmem>>, vector<8x1xf32>
    %154 = vector.broadcast %153 : vector<8x1xf32> to vector<8x256xf32>
    %155 = arith.addf %152, %154 : vector<8x256xf32>
    %156 = arith.addf %95, %155 : vector<8x256xf32>
    %c0_141 = arith.constant 0 : index
    %c0_142 = arith.constant 0 : index
    %c0_143 = arith.constant 0 : index
    %157 = vector.load %arg16[%c0_141, %c0_142, %c0_143] : memref<1x8x256xf32, #tpu.memory_space<vmem>>, vector<1x8x256xf32>
    %158 = vector.shape_cast %157 : vector<1x8x256xf32> to vector<8x256xf32>
    %159 = vector.shape_cast %156 : vector<8x256xf32> to vector<1x8x256xf32>
    tpu.vector_store %arg16[%c0_141, %c0_142, %c0_143], %159 {strides = array<i32>} : memref<1x8x256xf32, #tpu.memory_space<vmem>>, vector<1x8x256xf32>,
    return
  }
  func.func @transform_0(%arg0: i32) -> (i32, i32, i32) {
    %c0_i32 = arith.constant 0 : i32
    %c0_i32_0 = arith.constant 0 : i32
    %c0_i32_1 = arith.constant 0 : i32
    return %arg0, %c0_i32, %c0_i32_0 : i32, i32, i32
  }
  func.func @transform_1(%arg0: i32) -> (i32, i32, i32) {
    %c0_i32 = arith.constant 0 : i32
    %c0_i32_0 = arith.constant 0 : i32
    %c0_i32_1 = arith.constant 0 : i32
    return %arg0, %c0_i32, %c0_i32_0 : i32, i32, i32
  }
  func.func @transform_2(%arg0: i32) -> (i32, i32) {
    %c0_i32 = arith.constant 0 : i32
    %c0_i32_0 = arith.constant 0 : i32
    %c0_i32_1 = arith.constant 0 : i32
    return %c0_i32, %c0_i32_0 : i32, i32
  }
  func.func @transform_3(%arg0: i32) -> (i32, i32) {
    %c0_i32 = arith.constant 0 : i32
    %c0_i32_0 = arith.constant 0 : i32
    %c0_i32_1 = arith.constant 0 : i32
    return %c0_i32, %c0_i32_0 : i32, i32
  }
  func.func @transform_4(%arg0: i32) -> (i32, i32) {
    %c0_i32 = arith.constant 0 : i32
    %c0_i32_0 = arith.constant 0 : i32
    %c0_i32_1 = arith.constant 0 : i32
    return %c0_i32, %c0_i32_0 : i32, i32
  }
  func.func @transform_5(%arg0: i32) -> (i32, i32) {
    %c0_i32 = arith.constant 0 : i32
    %c0_i32_0 = arith.constant 0 : i32
    %c0_i32_1 = arith.constant 0 : i32
    return %c0_i32, %c0_i32_0 : i32, i32
  }
  func.func @transform_6(%arg0: i32) -> (i32, i32) {
    %c0_i32 = arith.constant 0 : i32
    %c0_i32_0 = arith.constant 0 : i32
    %c0_i32_1 = arith.constant 0 : i32
    return %c0_i32, %c0_i32_0 : i32, i32
  }
  func.func @transform_7(%arg0: i32) -> (i32, i32) {
    %c0_i32 = arith.constant 0 : i32
    %c0_i32_0 = arith.constant 0 : i32
    %c0_i32_1 = arith.constant 0 : i32
    return %c0_i32, %c0_i32_0 : i32, i32
  }
  func.func @transform_8(%arg0: i32) -> (i32, i32) {
    %c0_i32 = arith.constant 0 : i32
    %c0_i32_0 = arith.constant 0 : i32
    %c0_i32_1 = arith.constant 0 : i32
    return %c0_i32, %c0_i32_0 : i32, i32
  }
  func.func @transform_9(%arg0: i32) -> (i32, i32) {
    %c0_i32 = arith.constant 0 : i32
    %c0_i32_0 = arith.constant 0 : i32
    %c0_i32_1 = arith.constant 0 : i32
    return %c0_i32, %c0_i32_0 : i32, i32
  }
  func.func @transform_10(%arg0: i32) -> (i32, i32) {
    %c0_i32 = arith.constant 0 : i32
    %c0_i32_0 = arith.constant 0 : i32
    %c0_i32_1 = arith.constant 0 : i32
    return %c0_i32, %c0_i32_0 : i32, i32
  }
  func.func @transform_11(%arg0: i32) -> (i32, i32) {
    %c0_i32 = arith.constant 0 : i32
    %c0_i32_0 = arith.constant 0 : i32
    %c0_i32_1 = arith.constant 0 : i32
    return %c0_i32, %c0_i32_0 : i32, i32
  }
  func.func @transform_12(%arg0: i32) -> (i32, i32) {
    %c0_i32 = arith.constant 0 : i32
    %c0_i32_0 = arith.constant 0 : i32
    %c0_i32_1 = arith.constant 0 : i32
    return %c0_i32, %c0_i32_0 : i32, i32
  }
  func.func @transform_13(%arg0: i32) -> (i32, i32) {
    %c0_i32 = arith.constant 0 : i32
    %c0_i32_0 = arith.constant 0 : i32
    %c0_i32_1 = arith.constant 0 : i32
    return %c0_i32, %c0_i32_0 : i32, i32
  }
  func.func @transform_14(%arg0: i32) -> (i32, i32) {
    %c0_i32 = arith.constant 0 : i32
    %c0_i32_0 = arith.constant 0 : i32
    %c0_i32_1 = arith.constant 0 : i32
    return %c0_i32, %c0_i32_0 : i32, i32
  }
  func.func @transform_15(%arg0: i32) -> (i32, i32, i32) {
    %c0_i32 = arith.constant 0 : i32
    %c0_i32_0 = arith.constant 0 : i32
    %c0_i32_1 = arith.constant 0 : i32
    return %arg0, %c0_i32, %c0_i32_0 : i32, i32, i32
  }
}

</mosaic_0001>

<bundles_post_ra>
// kernel: refine_forward.1
= control target key start
LH: loop header
LB: loop body
LE: loop exit
PB: predicated region body
PF: predicated region fallthrough
CT: control target
= control target key end

     0   :  { %s2184_s18 = smov 0   ;;  %s2739_s0 = inlined_call_operand.vmem [shape: f32[2,4,256], index: 0, kind: input, shape index: {}]   ;;  %s2740_s1 = inlined_call_operand.vmem [shape: f32[2,8,64], index: 1, kind: input, shape index: {}]   ;;  %s2741_s2 = inlined_call_operand.vmem [shape: f32[64,256], index: 2, kind: input, shape index: {}]   ;;  %s2742_s3 = inlined_call_operand.vmem [shape: f32[36,256], index: 3, kind: input, shape index: {}]   ;;  %s2743_s4 = inlined_call_operand.vmem [shape: f32[72,256], index: 4, kind: input, shape index: {}]   ;;  %s2744_s5 = inlined_call_operand.vmem [shape: f32[8,36], index: 5, kind: input, shape index: {}]   ;;  %s2745_s6 = inlined_call_operand.vmem [shape: f32[8,1], index: 6, kind: input, shape index: {}]   ;;  %s2746_s7 = inlined_call_operand.vmem [shape: f32[8,72], index: 7, kind: input, shape index: {}]   ;;  %s2747_s8 = inlined_call_operand.vmem [shape: f32[8,1], index: 8, kind: input, shape index: {}]   ;;  %s2748_s9 = inlined_call_operand.vmem [shape: f32[8,72], index: 9, kind: input, shape index: {}]   ;;  %s2749_s10 = inlined_call_operand.vmem [shape: f32[8,1], index: 10, kind: input, shape index: {}]   ;;  %s2750_s11 = inlined_call_operand.vmem [shape: f32[8,72], index: 11, kind: input, shape index: {}]   ;;  %s2751_s12 = inlined_call_operand.vmem [shape: f32[8,1], index: 12, kind: input, shape index: {}]   ;;  %s2752_s13 = inlined_call_operand.vmem [shape: f32[8,72], index: 13, kind: input, shape index: {}]   ;;  %s2753_s14 = inlined_call_operand.vmem [shape: f32[8,1], index: 14, kind: input, shape index: {}]   ;;  %s2754_s15 = inlined_call_operand.vmem [shape: f32[2,8,256], index: 15, kind: output, shape index: {}]  }
   0x1   :  { %2784 = sst [smem:[#allocation3_spill]] %s2739_s0 }
   0x2   :  { %2785 = sst [smem:[#allocation4_spill]] %s2742_s3 }
   0x3   :  { %2786 = sst [smem:[#allocation5_spill]] %s2743_s4 }
   0x4 LB: > { %s1832_s19 = sadd.s32 4294967295, %s2092_s18   ;;  %p1836_p0 = scmp.ge.s32.totalorder %s2092_s18, 1  ;;  %s2092_s18 = sphi %s2184_s18, %s25_s18  }
   0x5   : > { %p446_p1 = scmp.lt.s32.totalorder %s2092_s18, 3 }
   0x7   : > { %p447_p2 = pnand %p1836_p0, %p446_p1 }
   0x8   : > { %p498_p3 = scmp.lt.s32.totalorder (!%p447_p2), %s1832_s19, 1  ;;  %s2787_s0 = sld [smem:[#allocation3_spill]] (!%p447_p2)  ;;  %v2101_v3 = vmov (!%p447_p2), 0.0   ;;  %v2103_v4 = vmov (!%p447_p2), 0   ;;  %v648_v5 = vld [vmem:[%s2745_s6] sm:$0xff] (!%p447_p2)  ;;  %vm523_vm0 = vcmask (!%p447_p2), 1043592  }
   0x9   : > { %450 = sbr.rel (%p447_p2) target bundleno = 1900 (0x76c), region = 80  ;;  %s2780_s24 = smov (!%p447_p2), 16   ;;  %729 = vmatprep.mubr.f32.mxu0 (!%p447_p2), %v2101_v3  ;;  %965 = vmatprep.mubr.f32.mxu1 (!%p447_p2), %v2101_v3  ;;  %vm546_vm1 = vcmask (!%p447_p2), 1043576   ;;  %vm2771_vm2 = vcmask (!%p447_p2), 130048   ;;  %vm535_vm3 = vcmask (!%p447_p2), 1047684   ;;  %vm2773_vm4 = vcmask (!%p447_p2), 121856  }
   0xa   : > { %s2782_s25 = smov (!%p447_p2), 17   ;;  %s2767_s26 = smov (!%p447_p2), 15   ;;  %2082 = vset.pattern.permute.xlu0 (!%p447_p2), %v2103_v4  ;;  %2083 = vset.pattern.permute.xlu1 (!%p447_p2), %v2103_v4  ;;  %vm2775_vm5 = vcmask (!%p447_p2), 138240   ;;  %vm2772_vm6 = vcmask (!%p447_p2), 7168   ;;  %vm557_vm7 = vcmask (!%p447_p2), 1047564   ;;  %vm572_vm8 = vcmask (!%p447_p2), 1039364  }
   0xb   : > { %s2765_s27 = smov (!%p447_p2), 1   ;;  %s2763_s28 = smov (!%p447_p2), 127   ;;  %vm2774_vm9 = vcmask (!%p447_p2), 1039360   ;;  %vm583_vm10 = vcmask (!%p447_p2), 920576   ;;  %vm578_vm11 = vcmask (!%p447_p2), 924672   ;;  %v647_v56 = vld [vmem:[%s2744_s5] sm:$0xff] (!%p447_p2) }
   0xc   : > { %s2760_s29 = smov (!%p447_p2), 113   ;;  %s2758_s30 = smov (!%p447_p2), 112  }
   0xd   : > { %s2756_s16 = smov (!%p447_p2), 111   ;;  %s2788_s3 = sld [smem:[#allocation4_spill]] (!%p447_p2) }
   0xe   : > { %s2789_s17 = smov (!%p447_p2), 113   ;;  %s2790_s21 = smov (!%p447_p2), 112  }
   0xf   : > { %s2792_s4 = sld [smem:[#allocation5_spill]] (!%p447_p2) }
  0x10   : > { %s2861_s19 = smov (!%p498_p3, %s1832_s19), 1 }
  0x11   : > { %s2755_s20 = sshll.u32 %s2861_s19, 3 }
  0x12   : > { %s502_s23 = scalar_lea.vmem %s2787_s0, %s2755_s20  ;;  %s2791_s20 = smov 111  }
  0x13   : > { %v512_v0 = vld [vmem:[%s502_s23] sm:$0xff]  ;;  %v608_v18 = vld [vmem:[%s2788_s3 + $0x8] sm:$0xff]  ;;  %v610_v19 = vld [vmem:[%s2788_s3 + $0x18] sm:$0xff] }
  0x14   : > { %529 = vrot.lane.b32.xlu1 %v512_v0, %s2780_s24  ;;  %561 = vst [vmem:[#allocation2 + $0x20] sm:$0xf] %v512_v0  ;;  %515 = vrot.lane.b32.xlu0 %v512_v0, %s2782_s25  ;;  %v526_v1 = vcombine.low %v512_v0, %v512_v0  ;;  %v514_v2 = vcombine.high %v512_v0, %v512_v0  ;;  %v607_v22 = vld [vmem:[%s2788_s3] sm:$0xff]  ;;  %v609_v23 = vld [vmem:[%s2788_s3 + $0x10] sm:$0xff]  ;;  %vm618_vm12 = vcmp.ne.f32.partialorder %v608_v18, 0.0  ;;  %vm620_vm13 = vcmp.ne.f32.partialorder %v610_v19, 0.0 }
  0x15   : > { %vm617_vm14 = vcmp.ne.f32.partialorder %v607_v22, 0.0  ;;  %vm619_vm15 = vcmp.ne.f32.partialorder %v609_v23, 0.0  ;;  %v612_v37 = vld [vmem:[%s2788_s3 + $0x28] sm:$0xff]  ;;  %v614_v38 = vld [vmem:[%s2788_s3 + $0x38] sm:$0xff]  ;;  %v611_v39 = vld [vmem:[%s2788_s3 + $0x20] sm:$0xff] }
  0x16   : > { %562 = vst [vmem:[#allocation2 + $0x28] sm:$0xf] %v514_v2  ;;  %v613_v40 = vld [vmem:[%s2788_s3 + $0x30] sm:$0xff]  ;;  %v616_v44 = vld [vmem:[%s2788_s3 + $0x48] sm:$0xf]  ;;  %v822_v23 = vld [vmem:[%s2792_s4 + $0x20] sm:$0xff] }
  0x17   : > { %v615_v47 = vld [vmem:[%s2788_s3 + $0x40] sm:$0xf]  ;;  %v819_v4 = vld [vmem:[%s2792_s4 + $0x8] sm:$0xff]  ;;  %s2828_s3 = smov 17  }
  0x18   : > { %538 = vrot.lane.b32.xlu0 %v512_v0, %s2767_s26  ;;  %527 = vrot.lane.b32.xlu1 %v526_v1, %s2780_s24 }
  0x1c   : > { %540 = vrot.lane.b32.xlu1 %v514_v2, %s2767_s26  ;;  %517 = vrot.lane.b32.xlu0 %v514_v2, %s2782_s25 }
  0x20   : > { %551 = vrot.lane.b32.xlu1 %v512_v0, %s2765_s27  ;;  %549 = vrot.lane.b32.xlu0 %v526_v1, %s2765_s27 }
  0x24   : > { %565 = vrot.lane.b32.xlu1 %v512_v0, %s2763_s28  ;;  %563 = vrot.lane.b32.xlu0 %v526_v1, %s2763_s28 }
  0x28   : > { %576 = vrot.lane.b32.xlu1 %v514_v2, %s2760_s29  ;;  %574 = vrot.lane.b32.xlu0 %v512_v0, %s2760_s29  ;;  %s2811_s29 = smov 15  }
  0x2c   : > { %587 = vrot.lane.b32.xlu1 %v512_v0, %s2758_s30  ;;  %585 = vrot.lane.b32.xlu0 %v526_v1, %s2758_s30  ;;  %s2812_s30 = smov 1  }
  0x30   : > { %598 = vrot.lane.b32.xlu1 %v514_v2, %s2756_s16  ;;  %596 = vrot.lane.b32.xlu0 %v512_v0, %s2756_s16  ;;  %v891_v0 = vld [vmem:[%s2747_s8] sm:$0xff]  ;;  %s2827_s16 = sshll.u32 %s2861_s19, 3 }
  0x34   : > { %651 = vperm.xlu0 %2082, %v648_v5   ;;  %v821_v5 = vld [vmem:[%s2792_s4 + $0x18] sm:$0xff] }
  0x86   : > { %v530_v6 = vpop.permute.xlu1 %529  ;;  %v516_v7 = vpop.permute.xlu0 %515 }
  0x87   : > { %524 = vst.msk [vmem:[#allocation2] sm:$0xf] %vm523_vm0, %v516_v7  ;;  %vm1935_vm0 = vmpackc.low %vm620_vm13, %vm618_vm12  ;;  %vm622_vm12 = vcmp.ne.f32.partialorder %v612_v37, 0.0  ;;  %vm624_vm13 = vcmp.ne.f32.partialorder %v614_v38, 0.0  ;;  %v829_v37 = vld [vmem:[%s2792_s4 + $0x58] sm:$0xff]  ;;  %v826_v38 = vld [vmem:[%s2792_s4 + $0x40] sm:$0xff] }
  0x8a   : > { %v539_v8 = vpop.permute.xlu0 %538  ;;  %v528_v9 = vpop.permute.xlu1 %527 }
  0x8b   : > { %547 = vst.msk [vmem:[#allocation2 + $0x10] sm:$0xf] %vm546_vm1, %v539_v8  ;;  %v532_v10 = vsel %vm2771_vm2, %v528_v9, %v530_v6  ;;  %vm594_vm1 = vcmask 916484  }
  0x8c   : > { %536 = vst.msk [vmem:[#allocation2] sm:$0xf0] %vm535_vm3, %v528_v9  ;;  %537 = vst [vmem:[#allocation2 + $0x8] sm:$0xf0] %v532_v10  ;;  %vm2776_vm3 = vcmask 916480   ;;  %v820_v9 = vld [vmem:[%s2792_s4 + $0x10] sm:$0xff] }
  0x8e   : > { %v541_v11 = vpop.permute.xlu1 %540  ;;  %v518_v12 = vpop.permute.xlu0 %517 }
  0x8f   : > { %v543_v13 = vsel %vm2773_vm4, %v539_v8, %v541_v11  ;;  %v520_v14 = vsel %vm2775_vm5, %v516_v7, %v518_v12  ;;  %v818_v8 = vld [vmem:[%s2792_s4] sm:$0xff] }
  0x90   : > { %548 = vst [vmem:[#allocation2 + $0x18] sm:$0xf] %v543_v13  ;;  %525 = vst [vmem:[#allocation2 + $0x8] sm:$0xf] %v520_v14 }
  0x92   : > { %v552_v15 = vpop.permute.xlu1 %551  ;;  %v550_v16 = vpop.permute.xlu0 %549 }
  0x93   : > { %v554_v17 = vsel %vm2772_vm6, %v550_v16, %v552_v15  ;;  %558 = vst.msk [vmem:[#allocation2 + $0x10] sm:$0xf0] %vm557_vm7, %v550_v16  ;;  %v627_v32 = vld [vmem:[#allocation2] sm:$0xff]  ;;  %vm1938_vm7 = vmpackc.low %vm619_vm15, %vm617_vm14  ;;  %vm621_vm14 = vcmp.ne.f32.partialorder %v611_v39, 0.0  ;;  %vm623_vm15 = vcmp.ne.f32.partialorder %v613_v40, 0.0  ;;  %v828_v39 = vld [vmem:[%s2792_s4 + $0x50] sm:$0xff] }
  0x94   : > { %559 = vst [vmem:[#allocation2 + $0x18] sm:$0xf0] %v554_v17 }
  0x96   : > { %v566_v20 = vpop.permute.xlu1 %565  ;;  %v564_v21 = vpop.permute.xlu0 %563 }
  0x97   : > { %573 = vst.msk [vmem:[#allocation2 + $0x28] sm:$0xf0] %vm572_vm8, %v566_v20  ;;  %v568_v24 = vsel %vm2774_vm9, %v564_v21, %v566_v20  ;;  %v628_v29 = vld [vmem:[#allocation2 + $0x8] sm:$0xff]  ;;  %vm605_vm8 = vcmask 904192   ;;  %v825_v21 = vld [vmem:[%s2792_s4 + $0x38] sm:$0xff] }
  0x98   : > { %571 = vst [vmem:[#allocation2 + $0x20] sm:$0xf0] %v568_v24  ;;  %v823_v20 = vld [vmem:[%s2792_s4 + $0x28] sm:$0xff]  ;;  %v824_v24 = vld [vmem:[%s2792_s4 + $0x30] sm:$0xff] }
  0x9a   : > { %v577_v25 = vpop.permute.xlu1 %576  ;;  %v575_v26 = vpop.permute.xlu0 %574  ;;  %v629_v27 = vld [vmem:[#allocation2 + $0x10] sm:$0xff] }
  0x9b   : > { %584 = vst.msk [vmem:[#allocation2 + $0x38] sm:$0xf] %vm583_vm10, %v577_v25  ;;  %v579_v28 = vsel %vm578_vm11, %v575_v26, %v577_v25  ;;  %v630_v30 = vld [vmem:[#allocation2 + $0x18] sm:$0xff]  ;;  %v1937_v33 = vpack.c.bf16 %v629_v27, %v627_v32  ;;  %vm2762_vm10 = vcmask 908288  }
  0x9c   : > { %582 = vst [vmem:[#allocation2 + $0x30] sm:$0xf] %v579_v28  ;;  %v1934_v31 = vpack.c.bf16 %v630_v30, %v628_v29 }
  0x9e   : > { %v588_v34 = vpop.permute.xlu1 %587  ;;  %1936 = vmatprep.subr.msk.bf16.mxu0 %vm1935_vm0, %v1934_v31  ;;  %v586_v35 = vpop.permute.xlu0 %585  ;;  %vm1941_vm0 = vmpackc.low %vm624_vm13, %vm622_vm12  ;;  %v632_v45 = vld [vmem:[#allocation2 + $0x28] sm:$0xff]  ;;  %vm654_vm12 = vcmask 293888   ;;  %vm2778_vm13 = vcmask 1047688  }
  0x9f   : > { %595 = vst.msk [vmem:[#allocation2 + $0x38] sm:$0xf0] %vm594_vm1, %v588_v34  ;;  %v590_v36 = vsel %vm2776_vm3, %v586_v35, %v588_v34  ;;  %1939 = vmatpush1.bf16.msk.msra.mxu0 %vm1938_vm7, %v1937_v33  ;;  %v631_v49 = vld [vmem:[#allocation2 + $0x20] sm:$0xff]  ;;  %vm1944_vm1 = vmpackc.low %vm623_vm15, %vm621_vm14  ;;  %vm626_vm7 = vcmp.ne.f32.partialorder %v616_v44, 0.0  ;;  %vm2769_vm14 = vcmask 1047672   ;;  %vm2770_vm15 = vcmask 1047560  }
  0xa0   : > { %593 = vst [vmem:[#allocation2 + $0x30] sm:$0xf0] %v590_v36  ;;  %v827_v36 = vld [vmem:[%s2792_s4 + $0x48] sm:$0xff] }
  0xa2   : > { %v599_v41 = vpop.permute.xlu1 %598  ;;  %v597_v42 = vpop.permute.xlu0 %596 }
  0xa3   : > { %606 = vst.msk [vmem:[#allocation2 + $0x48] sm:$0xf] %vm605_vm8, %v599_v41  ;;  %v601_v43 = vsel %vm2762_vm10, %v597_v42, %v599_v41  ;;  %vm658_vm8 = vcmask 1043456   ;;  %vm625_vm10 = vcmp.ne.f32.partialorder %v615_v47, 0.0  ;;  %v1680_v47 = vld [vmem:[%s2752_s13] sm:$0xff] }
  0xa4   : > { %604 = vst [vmem:[#allocation2 + $0x40] sm:$0xf] %v601_v43 }
  0xa6   : > { %v634_v46 = vld [vmem:[#allocation2 + $0x38] sm:$0xff] }
  0xa7   : > { %v1940_v48 = vpack.c.bf16 %v634_v46, %v632_v45  ;;  %v633_v50 = vld [vmem:[#allocation2 + $0x30] sm:$0xff] }
  0xa8   : > { %v1943_v51 = vpack.c.bf16 %v633_v50, %v631_v49  ;;  %v831_v49 = vld [vmem:[%s2792_s4 + $0x68] sm:$0xff]  ;;  %v833_v50 = vld [vmem:[%s2792_s4 + $0x78] sm:$0xff] }
  0xa9   : > { %1942 = vmatprep.subr.msk.bf16.mxu0 %vm1941_vm0, %v1940_v48  ;;  %vm837_vm0 = vcmp.ne.f32.partialorder %v819_v4, 0.0 }
  0xaa   : > { %1945 = vmatpush1.bf16.msk.msra.mxu0 %vm1944_vm1, %v1943_v51  ;;  %v636_v52 = vld [vmem:[#allocation2 + $0x48] sm:$0xf]  ;;  %vm839_vm1 = vcmp.ne.f32.partialorder %v821_v5, 0.0  ;;  %v830_v51 = vld [vmem:[%s2792_s4 + $0x60] sm:$0xff] }
  0xab   : > { %v646_v53 = vsel %vm626_vm7, %v636_v52, 0.0  ;;  %v635_v54 = vld [vmem:[#allocation2 + $0x40] sm:$0xf]  ;;  %vm836_vm7 = vcmp.ne.f32.partialorder %v818_v8, 0.0  ;;  %v832_v52 = vld [vmem:[%s2792_s4 + $0x70] sm:$0xff] }
  0xac   : > { %1850 = vmatprep.subr.msk.mxu0 %vm658_vm8, %v646_v53  ;;  %v645_v55 = vsel %vm625_vm10, %v635_v54, 0.0  ;;  %vm2779_vm10 = vcmask 1047680  }
  0xae   : > { %1851 = vmatpush1.msk.msra.mxu0 %vm658_vm8, %v645_v55  ;;  %vm838_vm8 = vcmp.ne.f32.partialorder %v820_v9, 0.0 }
  0xaf   : > { %1852 = vmatmul.mubr.msk.f32.vlgmr.msra.gmra.mrb[0].mxu0 %vm654_vm12, %v647_v56  ;;  %vm2327_vm12 = vmpackc.low %vm839_vm1, %vm837_vm0  ;;  %vm841_vm0 = vcmp.ne.f32.partialorder %v823_v20, 0.0  ;;  %vm843_vm1 = vcmp.ne.f32.partialorder %v825_v21, 0.0  ;;  %v2412_v56 = vld [vmem:[%s2792_s4 + $0x88] sm:$0xff] }
  0xb0   : > { %1196 = vmatprep.mubr.f32.mxu0 %v2101_v3 }
  0xb3   : > { %v652_v57 = vpop.permute.xlu0 %651 }
 0x182   : > { %v731_v58 = vpop.f32.mrb[0].mxu0 }
 0x183   : > { %v2264_v59 = vadd.f32 %v731_v58, %v652_v57  ;;  %v733_v60 = vpop.f32.mrb[1].mxu0 }
 0x184   : > { %v2269_v62 = vadd.f32 %v733_v60, %v652_v57 }
 0x185   : > { %v2267_v61 = vmax.f32 %v2264_v59, 0.0 }
 0x186   : > { %v2276_v63 = vmax.f32 %v2269_v62, 0.0 }
 0x187   : > { %750 = vrot.lane.b32.xlu0 %v2267_v61, %s2780_s24  ;;  %740 = vrot.lane.b32.xlu1 %v2267_v61, %s2782_s25 }
 0x18b   : > { %760 = vrot.lane.b32.xlu0 %v2267_v61, %s2767_s26  ;;  %742 = vrot.lane.b32.xlu1 %v2276_v63, %s2782_s25 }
 0x18f   : > { %770 = vrot.lane.b32.xlu0 %v2267_v61, %s2765_s27  ;;  %752 = vrot.lane.b32.xlu1 %v2276_v63, %s2780_s24 }
 0x193   : > { %782 = vrot.lane.b32.xlu0 %v2267_v61, %s2763_s28  ;;  %762 = vrot.lane.b32.xlu1 %v2276_v63, %s2767_s26  ;;  %s2813_s26 = smov 127  }
 0x197   : > { %791 = vrot.lane.b32.xlu0 %v2267_v61, %s2789_s17  ;;  %772 = vrot.lane.b32.xlu1 %v2276_v63, %s2765_s27  ;;  %s506_s27 = scalar_lea.vmem %s2740_s1, %s2827_s16 }
 0x19b   : > { %800 = vrot.lane.b32.xlu0 %v2267_v61, %s2790_s21  ;;  %784 = vrot.lane.b32.xlu1 %v2276_v63, %s2763_s28 }
 0x19f   : > { %809 = vrot.lane.b32.xlu0 %v2267_v61, %s2791_s20  ;;  %793 = vrot.lane.b32.xlu1 %v2276_v63, %s2789_s17 }
 0x1a3   : > { %894 = vperm.xlu0 %2082, %v891_v0   ;;  %802 = vrot.lane.b32.xlu1 %v2276_v63, %s2790_s21 }
 0x1a7   : > { %811 = vrot.lane.b32.xlu1 %v2276_v63, %s2791_s20 }
 0x1f9   : > { %v751_v1 = vpop.permute.xlu0 %750  ;;  %v741_v2 = vpop.permute.xlu1 %740 }
 0x1fa   : > { %758 = vst.msk [vmem:[#allocation2 + $0x10] sm:$0xff] %vm2779_vm10, %v751_v1 }
 0x1fb   : > { %748 = vst.msk [vmem:[#allocation2] sm:$0xff] %vm2778_vm13, %v741_v2 }
 0x1fd   : > { %v761_v6 = vpop.permute.xlu0 %760  ;;  %v743_v7 = vpop.permute.xlu1 %742 }
 0x1fe   : > { %768 = vst.msk [vmem:[#allocation2 + $0x20] sm:$0xff] %vm2769_vm14, %v761_v6  ;;  %v744_v14 = vsel %vm2775_vm5, %v741_v2, %v743_v7  ;;  %vm2331_vm14 = vmpackc.low %vm838_vm8, %vm836_vm7  ;;  %vm840_vm7 = vcmp.ne.f32.partialorder %v822_v23, 0.0  ;;  %vm842_vm8 = vcmp.ne.f32.partialorder %v824_v24, 0.0  ;;  %v2427_v2 = vld [vmem:[%s2792_s4 + $0x80] sm:$0xff]  ;;  %s2829_s4 = smov 16  }
 0x201   : > { %v771_v10 = vpop.permute.xlu0 %770  ;;  %v753_v11 = vpop.permute.xlu1 %752  ;;  %v856_v13 = vld [vmem:[#allocation2 + $0x10] sm:$0xff] }
 0x202   : > { %v854_v12 = vld [vmem:[#allocation2] sm:$0xff]  ;;  %778 = vst.msk [vmem:[#allocation2 + $0x30] sm:$0xff] %vm2770_vm15, %v771_v10  ;;  %v754_v15 = vsel %vm2771_vm2, %v751_v1, %v753_v11  ;;  %vm2353_vm15 = vmpackc.low %vm843_vm1, %vm841_vm0  ;;  %vm845_vm0 = vcmp.ne.f32.partialorder %v827_v36, 0.0  ;;  %vm847_vm1 = vcmp.ne.f32.partialorder %v829_v37, 0.0 }
 0x203   : > { %v1946_v17 = vpack.c.bf16 %v754_v15, %v744_v14  ;;  %v1949_v19 = vpack.c.bf16 %v856_v13, %v854_v12  ;;  %vm2357_vm2 = vmpackc.low %vm842_vm8, %vm840_vm7  ;;  %vm844_vm7 = vcmp.ne.f32.partialorder %v826_v38, 0.0  ;;  %vm846_vm8 = vcmp.ne.f32.partialorder %v828_v39, 0.0  ;;  %v1123_v15 = vld [vmem:[%s2749_s10] sm:$0xff] }
 0x205   : > { %v763_v22 = vpop.permute.xlu1 %762  ;;  %1948 = vmatprep.subr.msk.bf16.mxu1 %vm2327_vm12, %v1946_v17  ;;  %v858_v31 = vld [vmem:[#allocation2 + $0x20] sm:$0xff]  ;;  %v783_v35 = vpop.permute.xlu0 %782 }
 0x206   : > { %1951 = vmatpush1.bf16.msk.msra.mxu1 %vm2331_vm14, %v1949_v19  ;;  %v764_v27 = vsel %vm2773_vm4, %v761_v6, %v763_v22  ;;  %vm2386_vm4 = vmpackc.low %vm846_vm8, %vm844_vm7  ;;  %vm851_vm7 = vcmp.ne.f32.partialorder %v833_v50, 0.0  ;;  %vm848_vm8 = vcmp.ne.f32.partialorder %v830_v51, 0.0  ;;  %v890_v6 = vld [vmem:[%s2746_s7] sm:$0xff] }
 0x209   : > { %v773_v25 = vpop.permute.xlu1 %772  ;;  %v860_v26 = vld [vmem:[#allocation2 + $0x30] sm:$0xff]  ;;  %v792_v42 = vpop.permute.xlu0 %791 }
 0x20a   : > { %v774_v28 = vsel %vm2772_vm6, %v771_v10, %v773_v25  ;;  %v1955_v33 = vpack.c.bf16 %v860_v26, %v858_v31  ;;  %vm2380_vm6 = vmpackc.low %vm847_vm1, %vm845_vm0  ;;  %vm2805_vm0 = vcmask 908288   ;;  %vm849_vm1 = vcmp.ne.f32.partialorder %v831_v49, 0.0 }
 0x20b   : > { %v1952_v30 = vpack.c.bf16 %v774_v28, %v764_v27  ;;  %vm2414_vm5 = vmpackc.low %vm851_vm7, %vm849_vm1  ;;  %vm2777_vm1 = vcmask 588800   ;;  %vm2810_vm7 = vcmask 908288  }
 0x20d   : > { %v785_v34 = vpop.permute.xlu1 %784  ;;  %1954 = vmatprep.subr.msk.bf16.mxu1 %vm2353_vm15, %v1952_v30  ;;  %v801_v54 = vpop.permute.xlu0 %800 }
 0x20e   : > { %790 = vst.msk [vmem:[#allocation2 + $0x58] sm:$0xff] %vm2774_vm9, %v785_v34  ;;  %1957 = vmatpush1.bf16.msk.msra.mxu1 %vm2357_vm2, %v1955_v33  ;;  %v786_v41 = vsel %vm2774_vm9, %v783_v35, %v785_v34  ;;  %vm850_vm9 = vcmp.ne.f32.partialorder %v832_v52, 0.0 }
 0x20f   : > { %v1961_v48 = vpack.c.bf16 %v786_v41, %v2267_v61 }
 0x211   : > { %v794_v40 = vpop.permute.xlu1 %793  ;;  %v810_v5 = vpop.permute.xlu0 %809 }
 0x212   : > { %799 = vst.msk [vmem:[#allocation2 + $0x68] sm:$0xff] %vm578_vm11, %v794_v40  ;;  %v795_v61 = vsel %vm578_vm11, %v792_v42, %v794_v40 }
 0x215   : > { %v803_v43 = vpop.permute.xlu1 %802  ;;  %v865_v44 = vld [vmem:[#allocation2 + $0x58] sm:$0xff] }
 0x216   : > { %808 = vst.msk [vmem:[#allocation2 + $0x78] sm:$0xff] %vm2776_vm3, %v803_v43  ;;  %v1958_v46 = vpack.c.bf16 %v865_v44, %v2276_v63  ;;  %v804_v55 = vsel %vm2776_vm3, %v801_v54, %v803_v43  ;;  %vm853_vm3 = vcmp.ne.f32.partialorder %v2412_v56, 0.0 }
 0x217   : > { %v1967_v1 = vpack.c.bf16 %v804_v55, %v795_v61 }
 0x218   : > { %1960 = vmatprep.subr.msk.bf16.mxu1 %vm2380_vm6, %v1958_v46 }
 0x219   : > { %v812_v53 = vpop.permute.xlu1 %811  ;;  %1963 = vmatpush1.bf16.msk.msra.mxu1 %vm2386_vm4, %v1961_v48  ;;  %v867_v57 = vld [vmem:[#allocation2 + $0x68] sm:$0xff] }
 0x21a   : > { %817 = vst.msk [vmem:[#allocation2 + $0x88] sm:$0xff] %vm2805_vm0, %v812_v53  ;;  %vm2419_vm0 = vmpackc.low %vm850_vm9, %vm848_vm8  ;;  %vm852_vm9 = vcmp.ne.f32.partialorder %v2427_v2, 0.0  ;;  %v813_v7 = vsel %vm2810_vm7, %v810_v5, %v812_v53  ;;  %vm2814_vm8 = vcmask 138240   ;;  %vm2815_vm7 = vcmask 130048   ;;  %v1208_v5 = vld [vmem:[%s2741_s2 + $0x10] sm:$0xff] }
 0x21d   : > { %v869_v58 = vld [vmem:[#allocation2 + $0x78] sm:$0xff] }
 0x21e   : > { %v1964_v63 = vpack.c.bf16 %v869_v58, %v867_v57 }
 0x220   : > { %1966 = vmatprep.subr.msk.bf16.mxu1 %vm2414_vm5, %v1964_v63  ;;  %v1207_v63 = vld [vmem:[%s2741_s2 + $0x8] sm:$0xff] }
 0x221   : > { %1969 = vmatpush1.bf16.msk.msra.mxu1 %vm2419_vm0, %v1967_v1  ;;  %v871_v4 = vld [vmem:[#allocation2 + $0x88] sm:$0xff]  ;;  %v1209_v1 = vld [vmem:[%s2741_s2 + $0x18] sm:$0xff] }
 0x222   : > { %1869 = vmatprep.subr.msk.mxu1 %vm853_vm3, %v871_v4  ;;  %v895_v8 = vpop.permute.xlu0 %894  ;;  %v1206_v4 = vld [vmem:[%s2741_s2] sm:$0xff] }
 0x225   : > { %1870 = vmatpush1.msk.msra.mxu1 %vm852_vm9, %v813_v7 }
 0x226   : > { %1871 = vmatmul.mubr.msk.f32.vlgmr.msra.gmra.mrb[0].mxu1 %vm2777_vm1, %v890_v6  ;;  %vm2816_vm1 = vcmask 1047672  }
 0x227   : > { %1523 = vmatprep.mubr.f32.mxu1 %v2101_v3 }
 0x2f9   : > { %v967_v9 = vpop.f32.mrb[0].mxu1 }
 0x2fa   : > { %v968_v10 = vadd.f32 %v967_v9, %v895_v8  ;;  %v969_v11 = vpop.f32.mrb[1].mxu1  ;;  %v1213_v9 = vld [vmem:[%s2741_s2 + $0x38] sm:$0xff] }
 0x2fb   : > { %v970_v12 = vadd.f32 %v969_v11, %v895_v8  ;;  %v1211_v8 = vld [vmem:[%s2741_s2 + $0x28] sm:$0xff]  ;;  %v1122_v11 = vld [vmem:[%s2748_s9] sm:$0xff] }
 0x2fc   : > { %v2444_v13 = vmax.f32 %v968_v10, 0.0  ;;  %v1994_v10 = vpack.c.bf16 %v1209_v1, %v1207_v63 }
 0x2fd   : > { %v973_v14 = vmax.f32 %v970_v12, 0.0  ;;  %v1996_v12 = vpack.c.bf16 %v1208_v5, %v1206_v4 }
 0x2fe   : > { %976 = vrot.lane.b32.xlu1 %v2444_v13, %s2782_s25 }
 0x2ff   : > { %978 = vrot.lane.b32.xlu0 %v973_v14, %s2782_s25 }
 0x302   : > { %985 = vrot.lane.b32.xlu1 %v2444_v13, %s2780_s24 }
 0x303   : > { %987 = vrot.lane.b32.xlu0 %v973_v14, %s2780_s24 }
 0x306   : > { %994 = vrot.lane.b32.xlu1 %v2444_v13, %s2811_s29 }
 0x307   : > { %996 = vrot.lane.b32.xlu0 %v973_v14, %s2811_s29 }
 0x30a   : > { %1003 = vrot.lane.b32.xlu1 %v2444_v13, %s2812_s30 }
 0x30b   : > { %1005 = vrot.lane.b32.xlu0 %v973_v14, %s2812_s30 }
 0x30e   : > { %1014 = vrot.lane.b32.xlu1 %v2444_v13, %s2813_s26 }
 0x30f   : > { %1016 = vrot.lane.b32.xlu0 %v973_v14, %s2813_s26 }
 0x312   : > { %1023 = vrot.lane.b32.xlu1 %v2444_v13, %s2789_s17 }
 0x313   : > { %1025 = vrot.lane.b32.xlu0 %v973_v14, %s2789_s17 }
 0x316   : > { %1032 = vrot.lane.b32.xlu1 %v2444_v13, %s2790_s21 }
 0x317   : > { %1034 = vrot.lane.b32.xlu0 %v973_v14, %s2790_s21 }
 0x31a   : > { %1041 = vrot.lane.b32.xlu1 %v2444_v13, %s2791_s20 }
 0x31b   : > { %1043 = vrot.lane.b32.xlu0 %v973_v14, %s2791_s20 }
 0x31e   : > { %1126 = vperm.xlu1 %2083, %v1123_v15   ;;  %v1210_v15 = vld [vmem:[%s2741_s2 + $0x20] sm:$0xff] }
 0x370   : > { %v977_v17 = vpop.permute.xlu1 %976 }
 0x371   : > { %983 = vst.msk [vmem:[#allocation2] sm:$0xff] %vm2778_vm13, %v977_v17  ;;  %v979_v19 = vpop.permute.xlu0 %978  ;;  %vm2817_vm13 = vcmask 1047560  }
 0x372   : > { %v980_v22 = vsel %vm2814_vm8, %v977_v17, %v979_v19  ;;  %vm2819_vm8 = vcmask 7168   ;;  %v1212_v17 = vld [vmem:[%s2741_s2 + $0x30] sm:$0xff]  ;;  %v1215_v19 = vld [vmem:[%s2741_s2 + $0x48] sm:$0xff] }
 0x374   : > { %v986_v20 = vpop.permute.xlu1 %985 }
 0x375   : > { %992 = vst.msk [vmem:[#allocation2 + $0x10] sm:$0xff] %vm2779_vm10, %v986_v20  ;;  %v988_v21 = vpop.permute.xlu0 %987  ;;  %vm2818_vm10 = vcmask 121856  }
 0x376   : > { %v989_v23 = vsel %vm2815_vm7, %v986_v20, %v988_v21  ;;  %vm2823_vm7 = vcmask 908288   ;;  %v1217_v20 = vld [vmem:[%s2741_s2 + $0x58] sm:$0xff]  ;;  %v2000_v21 = vpack.c.bf16 %v1212_v17, %v1210_v15 }
 0x377   : > { %v1970_v24 = vpack.c.bf16 %v989_v23, %v980_v22  ;;  %v2002_v22 = vpack.c.bf16 %v1217_v20, %v1215_v19  ;;  %v1214_v23 = vld [vmem:[%s2741_s2 + $0x40] sm:$0xff] }
 0x378   : > { %v995_v25 = vpop.permute.xlu1 %994  ;;  %v1086_v28 = vld [vmem:[#allocation2] sm:$0xff] }
 0x379   : > { %1001 = vst.msk [vmem:[#allocation2 + $0x20] sm:$0xff] %vm2816_vm1, %v995_v25  ;;  %v997_v26 = vpop.permute.xlu0 %996  ;;  %1972 = vmatprep.subr.msk.bf16.mxu0 %vm2327_vm12, %v1970_v24  ;;  %vm2820_vm1 = vcmask 1039360   ;;  %v1216_v24 = vld [vmem:[%s2741_s2 + $0x50] sm:$0xff] }
 0x37a   : > { %v998_v34 = vsel %vm2818_vm10, %v995_v25, %v997_v26  ;;  %vm2821_vm10 = vmmov %vm2820_vm1  ;;  %v1219_v25 = vld [vmem:[%s2741_s2 + $0x68] sm:$0xff]  ;;  %v1221_v26 = vld [vmem:[%s2741_s2 + $0x78] sm:$0xff] }
 0x37c   : > { %v1004_v27 = vpop.permute.xlu1 %1003  ;;  %v1088_v30 = vld [vmem:[#allocation2 + $0x10] sm:$0xff] }
 0x37d   : > { %1010 = vst.msk [vmem:[#allocation2 + $0x30] sm:$0xff] %vm2817_vm13, %v1004_v27  ;;  %v1006_v31 = vpop.permute.xlu0 %1005  ;;  %v1973_v33 = vpack.c.bf16 %v1088_v30, %v1086_v28  ;;  %vm2822_vm13 = vcmask 916480   ;;  %v2006_v28 = vpack.c.bf16 %v1221_v26, %v1219_v25  ;;  %v1218_v30 = vld [vmem:[%s2741_s2 + $0x60] sm:$0xff] }
 0x37e   : > { %v1007_v35 = vsel %vm2819_vm8, %v1004_v27, %v1006_v31  ;;  %vm2824_vm8 = vmmov %vm2822_vm13  ;;  %v2004_v27 = vpack.c.bf16 %v1216_v24, %v1214_v23  ;;  %v1220_v31 = vld [vmem:[%s2741_s2 + $0x70] sm:$0xff] }
 0x37f   : > { %1975 = vmatpush1.bf16.msk.msra.mxu0 %vm2331_vm14, %v1973_v33  ;;  %v1976_v36 = vpack.c.bf16 %v1007_v35, %v998_v34  ;;  %v2008_v33 = vpack.c.bf16 %v1220_v31, %v1218_v30  ;;  %v1205_v34 = vld [vmem:[%s506_s27] sm:$0xff] }
 0x380   : > { %v1015_v37 = vpop.permute.xlu1 %1014  ;;  %v1090_v39 = vld [vmem:[#allocation2 + $0x20] sm:$0xff] }
 0x381   : > { %v1017_v38 = vpop.permute.xlu0 %1016  ;;  %1978 = vmatprep.subr.msk.bf16.mxu0 %vm2353_vm15, %v1976_v36  ;;  %v1449_v30 = vld [vmem:[%s2750_s11] sm:$0xff] }
 0x382   : > { %1022 = vst.msk [vmem:[#allocation2 + $0x58] sm:$0xff] %vm2820_vm1, %v1017_v38  ;;  %v1018_v44 = vsel %vm2821_vm10, %v1015_v37, %v1017_v38  ;;  %vm2825_vm1 = vmmov %vm2823_vm7  ;;  %vm2826_vm10 = vcmask 588800  }
 0x383   : > { %v1985_v50 = vpack.c.bf16 %v1018_v44, %v2444_v13 }
 0x384   : > { %v1092_v40 = vld [vmem:[#allocation2 + $0x30] sm:$0xff]  ;;  %v1024_v43 = vpop.permute.xlu1 %1023 }
 0x385   : > { %v1026_v41 = vpop.permute.xlu0 %1025  ;;  %v1979_v42 = vpack.c.bf16 %v1092_v40, %v1090_v39 }
 0x386   : > { %1031 = vst.msk [vmem:[#allocation2 + $0x68] sm:$0xff] %vm578_vm11, %v1026_v41  ;;  %v1027_v57 = vsel %vm578_vm11, %v1024_v43, %v1026_v41 }
 0x387   : > { %1981 = vmatpush1.bf16.msk.msra.mxu0 %vm2357_vm2, %v1979_v42 }
 0x388   : > { %v1033_v51 = vpop.permute.xlu1 %1032 }
 0x389   : > { %v1035_v46 = vpop.permute.xlu0 %1034  ;;  %v1097_v48 = vld [vmem:[#allocation2 + $0x58] sm:$0xff] }
 0x38a   : > { %1040 = vst.msk [vmem:[#allocation2 + $0x78] sm:$0xff] %vm2822_vm13, %v1035_v46  ;;  %v1982_v49 = vpack.c.bf16 %v1097_v48, %v973_v14  ;;  %v1036_v53 = vsel %vm2824_vm8, %v1033_v51, %v1035_v46  ;;  %v1998_v14 = vpack.c.bf16 %v1213_v9, %v1211_v8  ;;  %vm1222_vm13 = vcmask 523264  }
 0x38b   : > { %v1991_v61 = vpack.c.bf16 %v1036_v53, %v1027_v57  ;;  %vm2831_vm8 = vcmask 1047680  }
 0x38c   : > { %1984 = vmatprep.subr.msk.bf16.mxu0 %vm2380_vm6, %v1982_v49  ;;  %v1042_v6 = vpop.permute.xlu1 %1041 }
 0x38d   : > { %v1044_v52 = vpop.permute.xlu0 %1043  ;;  %1987 = vmatpush1.bf16.msk.msra.mxu0 %vm2386_vm4, %v1985_v50  ;;  %v1099_v54 = vld [vmem:[#allocation2 + $0x68] sm:$0xff] }
 0x38e   : > { %1049 = vst.msk [vmem:[#allocation2 + $0x88] sm:$0xff] %vm2823_vm7, %v1044_v52  ;;  %v1045_v13 = vsel %vm2825_vm1, %v1042_v6, %v1044_v52  ;;  %vm2830_vm7 = vcmask 1047688   ;;  %vm2832_vm1 = vcmask 138240  }
 0x391   : > { %v1101_v55 = vld [vmem:[#allocation2 + $0x78] sm:$0xff] }
 0x392   : > { %v1988_v58 = vpack.c.bf16 %v1101_v55, %v1099_v54 }
 0x394   : > { %1990 = vmatprep.subr.msk.bf16.mxu0 %vm2414_vm5, %v1988_v58 }
 0x395   : > { %1993 = vmatpush1.bf16.msk.msra.mxu0 %vm2419_vm0, %v1991_v61  ;;  %v1103_v7 = vld [vmem:[#allocation2 + $0x88] sm:$0xff] }
 0x396   : > { %1888 = vmatprep.subr.msk.mxu0 %vm853_vm3, %v1103_v7 }
 0x399   : > { %1889 = vmatpush1.msk.msra.mxu0 %vm852_vm9, %v1045_v13 }
 0x39a   : > { %1995 = vmatprep.subr.bf16.mxu0 %v1994_v10  ;;  %1890 = vmatmul.mubr.msk.f32.vlgmr.msra.gmra.mrb[2].mxu0 %vm2826_vm10, %v1122_v11  ;;  %vm2833_vm10 = vcmask 130048  }
 0x39b   : > { %1997 = vmatpush1.bf16.msra.mxu0 %v1996_v12  ;;  %1290 = vmatprep.mubr.f32.mxu0 %v2101_v3 }
 0x39c   : > { %1999 = vmatprep.subr.bf16.mxu0 %v1998_v14 }
 0x39d   : > { %v1127_v35 = vpop.permute.xlu1 %1126 }
 0x39e   : > { %v2058_v36 = vadd.f32 %v1127_v35, %v2264_v59  ;;  %v2060_v37 = vadd.f32 %v1127_v35, %v2269_v62  ;;  %v1450_v59 = vld [vmem:[%s2751_s12] sm:$0xff] }
 0x39f   : > { %2001 = vmatpush1.bf16.msra.mxu0 %v2000_v21 }
 0x3a0   : > { %2003 = vmatprep.subr.bf16.mxu0 %v2002_v22 }
 0x3a3   : > { %2005 = vmatpush1.bf16.msra.mxu0 %v2004_v27 }
 0x3a4   : > { %2007 = vmatprep.subr.bf16.mxu0 %v2006_v28 }
 0x3a7   : > { %2009 = vmatpush1.bf16.msra.mxu0 %v2008_v33 }
 0x3aa   : > { %1891 = vmatmul.mubr.msk.f32.vlgmr.msra.gmra.mrb[2].mxu0 %vm1222_vm13, %v1205_v34  ;;  %vm2834_vm13 = vcmask 1047672  }
 0x47d   : > { %v1292_v38 = vpop.f32.mrb[2].mxu0 }
 0x47e   : > { %v2570_v39 = vadd.f32 %v2058_v36, %v1292_v38  ;;  %v1294_v40 = vpop.f32.mrb[3].mxu0 }
 0x47f   : > { %v2572_v41 = vadd.f32 %v2060_v37, %v1294_v40 }
 0x480   : > { %v2575_v42 = vmax.f32 %v2570_v39, 0.0 }
 0x481   : > { %v1300_v43 = vmax.f32 %v2572_v41, 0.0 }
 0x482   : > { %1303 = vrot.lane.b32.xlu0 %v2575_v42, %s2828_s3 }
 0x483   : > { %1305 = vrot.lane.b32.xlu1 %v1300_v43, %s2828_s3 }
 0x486   : > { %1312 = vrot.lane.b32.xlu0 %v2575_v42, %s2829_s4 }
 0x487   : > { %1314 = vrot.lane.b32.xlu1 %v1300_v43, %s2829_s4 }
 0x48a   : > { %1321 = vrot.lane.b32.xlu0 %v2575_v42, %s2811_s29 }
 0x48b   : > { %1323 = vrot.lane.b32.xlu1 %v1300_v43, %s2811_s29 }
 0x48e   : > { %1330 = vrot.lane.b32.xlu0 %v2575_v42, %s2812_s30 }
 0x48f   : > { %1332 = vrot.lane.b32.xlu1 %v1300_v43, %s2812_s30 }
 0x492   : > { %1341 = vrot.lane.b32.xlu0 %v2575_v42, %s2813_s26 }
 0x493   : > { %1343 = vrot.lane.b32.xlu1 %v1300_v43, %s2813_s26 }
 0x496   : > { %1350 = vrot.lane.b32.xlu0 %v2575_v42, %s2789_s17 }
 0x497   : > { %1352 = vrot.lane.b32.xlu1 %v1300_v43, %s2789_s17 }
 0x49a   : > { %1359 = vrot.lane.b32.xlu0 %v2575_v42, %s2790_s21 }
 0x49b   : > { %1361 = vrot.lane.b32.xlu1 %v1300_v43, %s2790_s21 }
 0x49e   : > { %1368 = vrot.lane.b32.xlu0 %v2575_v42, %s2791_s20 }
 0x49f   : > { %1370 = vrot.lane.b32.xlu1 %v1300_v43, %s2791_s20 }
 0x4a2   : > { %1453 = vperm.xlu0 %2082, %v1450_v59  }
 0x4f4   : > { %v1304_v62 = vpop.permute.xlu0 %1303 }
 0x4f5   : > { %1310 = vst.msk [vmem:[#allocation2] sm:$0xff] %vm2830_vm7, %v1304_v62  ;;  %v1306_v44 = vpop.permute.xlu1 %1305  ;;  %vm2835_vm7 = vcmask 1047560  }
 0x4f6   : > { %v1307_v49 = vsel %vm2832_vm1, %v1304_v62, %v1306_v44  ;;  %vm2837_vm1 = vcmask 7168  }
 0x4f8   : > { %v1313_v46 = vpop.permute.xlu0 %1312 }
 0x4f9   : > { %1319 = vst.msk [vmem:[#allocation2 + $0x10] sm:$0xff] %vm2831_vm8, %v1313_v46  ;;  %v1315_v48 = vpop.permute.xlu1 %1314  ;;  %vm2836_vm8 = vcmask 121856  }
 0x4fa   : > { %v1316_v50 = vsel %vm2833_vm10, %v1313_v46, %v1315_v48  ;;  %vm2838_vm10 = vcmask 1039360  }
 0x4fb   : > { %v2010_v51 = vpack.c.bf16 %v1316_v50, %v1307_v49 }
 0x4fc   : > { %v1322_v52 = vpop.permute.xlu0 %1321  ;;  %v1413_v55 = vld [vmem:[#allocation2] sm:$0xff] }
 0x4fd   : > { %1328 = vst.msk [vmem:[#allocation2 + $0x20] sm:$0xff] %vm2834_vm13, %v1322_v52  ;;  %v1324_v53 = vpop.permute.xlu1 %1323  ;;  %2012 = vmatprep.subr.msk.bf16.mxu1 %vm2327_vm12, %v2010_v51  ;;  %vm2839_vm13 = vmmov %vm2838_vm10 }
 0x4fe   : > { %v1325_v63 = vsel %vm2836_vm8, %v1322_v52, %v1324_v53  ;;  %vm2841_vm8 = vcmask 908288  }
 0x500   : > { %v1331_v54 = vpop.permute.xlu0 %1330  ;;  %v1415_v57 = vld [vmem:[#allocation2 + $0x10] sm:$0xff] }
 0x501   : > { %1337 = vst.msk [vmem:[#allocation2 + $0x30] sm:$0xff] %vm2835_vm7, %v1331_v54  ;;  %v1333_v58 = vpop.permute.xlu1 %1332  ;;  %v2013_v61 = vpack.c.bf16 %v1415_v57, %v1413_v55  ;;  %vm2840_vm7 = vcmask 916480  }
 0x502   : > { %v1334_v1 = vsel %vm2837_vm1, %v1331_v54, %v1333_v58  ;;  %vm2842_vm1 = vmmov %vm2840_vm7 }
 0x503   : > { %2015 = vmatpush1.bf16.msk.msra.mxu1 %vm2331_vm14, %v2013_v61  ;;  %v2016_v4 = vpack.c.bf16 %v1334_v1, %v1325_v63 }
 0x504   : > { %v1342_v5 = vpop.permute.xlu0 %1341  ;;  %v1417_v7 = vld [vmem:[#allocation2 + $0x20] sm:$0xff] }
 0x505   : > { %v1344_v6 = vpop.permute.xlu1 %1343  ;;  %2018 = vmatprep.subr.msk.bf16.mxu1 %vm2353_vm15, %v2016_v4 }
 0x506   : > { %1349 = vst.msk [vmem:[#allocation2 + $0x58] sm:$0xff] %vm2838_vm10, %v1344_v6  ;;  %v1345_v12 = vsel %vm2839_vm13, %v1342_v5, %v1344_v6  ;;  %vm2843_vm10 = vmmov %vm2841_vm8  ;;  %vm2844_vm13 = vcmask 588800  }
 0x507   : > { %v2025_v17 = vpack.c.bf16 %v1345_v12, %v2575_v42 }
 0x508   : > { %v1419_v8 = vld [vmem:[#allocation2 + $0x30] sm:$0xff]  ;;  %v1351_v11 = vpop.permute.xlu0 %1350 }
 0x509   : > { %v1353_v9 = vpop.permute.xlu1 %1352  ;;  %v2019_v10 = vpack.c.bf16 %v1419_v8, %v1417_v7 }
 0x50a   : > { %1358 = vst.msk [vmem:[#allocation2 + $0x68] sm:$0xff] %vm578_vm11, %v1353_v9  ;;  %v1354_v24 = vsel %vm578_vm11, %v1351_v11, %v1353_v9 }
 0x50b   : > { %2021 = vmatpush1.bf16.msk.msra.mxu1 %vm2357_vm2, %v2019_v10 }
 0x50c   : > { %v1360_v19 = vpop.permute.xlu0 %1359 }
 0x50d   : > { %v1362_v13 = vpop.permute.xlu1 %1361  ;;  %v1424_v14 = vld [vmem:[#allocation2 + $0x58] sm:$0xff] }
 0x50e   : > { %1367 = vst.msk [vmem:[#allocation2 + $0x78] sm:$0xff] %vm2840_vm7, %v1362_v13  ;;  %v2022_v15 = vpack.c.bf16 %v1424_v14, %v1300_v43  ;;  %v1363_v21 = vsel %vm2842_vm1, %v1360_v19, %v1362_v13  ;;  %vm2845_vm7 = vcmask 1047688   ;;  %vm2847_vm1 = vcmask 1047680  }
 0x50f   : > { %v2031_v26 = vpack.c.bf16 %v1363_v21, %v1354_v24 }
 0x510   : > { %2024 = vmatprep.subr.msk.bf16.mxu1 %vm2380_vm6, %v2022_v15  ;;  %v1369_v27 = vpop.permute.xlu0 %1368 }
 0x511   : > { %v1371_v20 = vpop.permute.xlu1 %1370  ;;  %2027 = vmatpush1.bf16.msk.msra.mxu1 %vm2386_vm4, %v2025_v17  ;;  %v1426_v22 = vld [vmem:[#allocation2 + $0x68] sm:$0xff] }
 0x512   : > { %1376 = vst.msk [vmem:[#allocation2 + $0x88] sm:$0xff] %vm2841_vm8, %v1371_v20  ;;  %v1372_v31 = vsel %vm2843_vm10, %v1369_v27, %v1371_v20  ;;  %vm2846_vm8 = vcmask 138240   ;;  %vm2848_vm10 = vcmask 130048  }
 0x515   : > { %v1428_v23 = vld [vmem:[#allocation2 + $0x78] sm:$0xff] }
 0x516   : > { %v2028_v25 = vpack.c.bf16 %v1428_v23, %v1426_v22 }
 0x518   : > { %2030 = vmatprep.subr.msk.bf16.mxu1 %vm2414_vm5, %v2028_v25 }
 0x519   : > { %2033 = vmatpush1.bf16.msk.msra.mxu1 %vm2419_vm0, %v2031_v26  ;;  %v1430_v28 = vld [vmem:[#allocation2 + $0x88] sm:$0xff] }
 0x51a   : > { %1908 = vmatprep.subr.msk.mxu1 %vm853_vm3, %v1430_v28 }
 0x51d   : > { %1909 = vmatpush1.msk.msra.mxu1 %vm852_vm9, %v1372_v31 }
 0x51e   : > { %1910 = vmatmul.mubr.msk.f32.vlgmr.msra.gmra.mrb[2].mxu1 %vm2844_vm13, %v1449_v30  ;;  %vm2849_vm13 = vcmask 1047672  }
 0x51f   : > { %1754 = vmatprep.mubr.f32.mxu1 %v2101_v3  ;;  %v1681_v3 = vld [vmem:[%s2753_s14] sm:$0xff] }
 0x521   : > { %v1454_v33 = vpop.permute.xlu0 %1453 }
 0x5f1   : > { %v1525_v34 = vpop.f32.mrb[2].mxu1 }
 0x5f2   : > { %v1526_v35 = vadd.f32 %v1525_v34, %v1454_v33  ;;  %v1527_v36 = vpop.f32.mrb[3].mxu1 }
 0x5f3   : > { %v1528_v37 = vadd.f32 %v1527_v36, %v1454_v33 }
 0x5f4   : > { %v2647_v38 = vmax.f32 %v1526_v35, 0.0 }
 0x5f5   : > { %v2649_v40 = vmax.f32 %v1528_v37, 0.0 }
 0x5f6   : > { %1570 = vst [vmem:[#allocation2 + $0x40] sm:$0xff] %v2647_v38  ;;  %1534 = vrot.lane.b32.xlu1 %v2647_v38, %s2828_s3 }
 0x5f7   : > { %1571 = vst [vmem:[#allocation2 + $0x48] sm:$0xff] %v2649_v40  ;;  %1536 = vrot.lane.b32.xlu0 %v2649_v40, %s2828_s3 }
 0x5fa   : > { %1543 = vrot.lane.b32.xlu1 %v2647_v38, %s2829_s4 }
 0x5fb   : > { %1545 = vrot.lane.b32.xlu0 %v2649_v40, %s2829_s4 }
 0x5fe   : > { %1552 = vrot.lane.b32.xlu1 %v2647_v38, %s2811_s29 }
 0x5ff   : > { %1554 = vrot.lane.b32.xlu0 %v2649_v40, %s2811_s29 }
 0x602   : > { %1561 = vrot.lane.b32.xlu1 %v2647_v38, %s2812_s30 }
 0x603   : > { %1563 = vrot.lane.b32.xlu0 %v2649_v40, %s2812_s30 }
 0x606   : > { %1572 = vrot.lane.b32.xlu1 %v2647_v38, %s2813_s26 }
 0x607   : > { %1574 = vrot.lane.b32.xlu0 %v2649_v40, %s2813_s26 }
 0x60a   : > { %1581 = vrot.lane.b32.xlu1 %v2647_v38, %s2789_s17 }
 0x60b   : > { %1583 = vrot.lane.b32.xlu0 %v2649_v40, %s2789_s17 }
 0x60e   : > { %1590 = vrot.lane.b32.xlu1 %v2647_v38, %s2790_s21 }
 0x60f   : > { %1592 = vrot.lane.b32.xlu0 %v2649_v40, %s2790_s21 }
 0x612   : > { %1599 = vrot.lane.b32.xlu1 %v2647_v38, %s2791_s20 }
 0x613   : > { %1601 = vrot.lane.b32.xlu0 %v2649_v40, %s2791_s20  ;;  %s1933_s20 = sshll.u32 %s2861_s19, 4 }
 0x614   : > { %s511_s22 = scalar_lea.vmem %s2754_s15, %s1933_s20 }
 0x616   : > { %1684 = vperm.xlu1 %2083, %v1681_v3  }
 0x668   : > { %v1535_v42 = vpop.permute.xlu1 %1534 }
 0x669   : > { %1541 = vst.msk [vmem:[#allocation2] sm:$0xff] %vm2845_vm7, %v1535_v42  ;;  %v1537_v43 = vpop.permute.xlu0 %1536  ;;  %vm2850_vm7 = vcmask 121856  }
 0x66a   : > { %v1538_v59 = vsel %vm2846_vm8, %v1535_v42, %v1537_v43  ;;  %vm2851_vm8 = vcmask 1047560  }
 0x66b   : > { %1542 = vst [vmem:[#allocation2 + $0x8] sm:$0xff] %v1538_v59 }
 0x66c   : > { %v1544_v62 = vpop.permute.xlu1 %1543 }
 0x66d   : > { %1550 = vst.msk [vmem:[#allocation2 + $0x10] sm:$0xff] %vm2847_vm1, %v1544_v62  ;;  %v1546_v44 = vpop.permute.xlu0 %1545  ;;  %vm2852_vm1 = vcmask 7168  }
 0x66e   : > { %v1547_v46 = vsel %vm2848_vm10, %v1544_v62, %v1546_v44 }
 0x66f   : > { %1551 = vst [vmem:[#allocation2 + $0x18] sm:$0xff] %v1547_v46  ;;  %v2034_v48 = vpack.c.bf16 %v1547_v46, %v1538_v59 }
 0x670   : > { %v1553_v49 = vpop.permute.xlu1 %1552  ;;  %v1644_v53 = vld [vmem:[#allocation2] sm:$0xff] }
 0x671   : > { %1559 = vst.msk [vmem:[#allocation2 + $0x20] sm:$0xff] %vm2849_vm13, %v1553_v49  ;;  %v1555_v50 = vpop.permute.xlu0 %1554  ;;  %2036 = vmatprep.subr.msk.bf16.mxu1 %vm2327_vm12, %v2034_v48  ;;  %vm2853_vm12 = vcmask 1039360  }
 0x672   : > { %v1556_v51 = vsel %vm2850_vm7, %v1553_v49, %v1555_v50  ;;  %vm2854_vm10 = vmmov %vm2853_vm12 }
 0x673   : > { %1560 = vst [vmem:[#allocation2 + $0x28] sm:$0xff] %v1556_v51 }
 0x674   : > { %v1562_v52 = vpop.permute.xlu1 %1561  ;;  %v1646_v54 = vld [vmem:[#allocation2 + $0x10] sm:$0xff] }
 0x675   : > { %1568 = vst.msk [vmem:[#allocation2 + $0x30] sm:$0xff] %vm2851_vm8, %v1562_v52  ;;  %v1564_v55 = vpop.permute.xlu0 %1563  ;;  %v2037_v57 = vpack.c.bf16 %v1646_v54, %v1644_v53 }
 0x676   : > { %v1565_v58 = vsel %vm2852_vm1, %v1562_v52, %v1564_v55 }
 0x677   : > { %1569 = vst [vmem:[#allocation2 + $0x38] sm:$0xff] %v1565_v58  ;;  %2039 = vmatpush1.bf16.msk.msra.mxu1 %vm2331_vm14, %v2037_v57  ;;  %v2040_v61 = vpack.c.bf16 %v1565_v58, %v1556_v51  ;;  %vm2855_vm14 = vcmask 916480  }
 0x678   : > { %v1573_v63 = vpop.permute.xlu1 %1572  ;;  %v1648_v5 = vld [vmem:[#allocation2 + $0x20] sm:$0xff] }
 0x679   : > { %v1575_v16 = vpop.permute.xlu0 %1574  ;;  %2042 = vmatprep.subr.msk.bf16.mxu1 %vm2353_vm15, %v2040_v61  ;;  %vm2856_vm15 = vmmov %vm2855_vm14 }
 0x67a   : > { %v1576_v1 = vsel %vm2853_vm12, %v1573_v63, %v1575_v16  ;;  %1580 = vst.msk [vmem:[#allocation2 + $0x58] sm:$0xff] %vm2854_vm10, %v1575_v16 }
 0x67b   : > { %v2049_v13 = vpack.c.bf16 %v1576_v1, %v2647_v38 }
 0x67c   : > { %v1582_v4 = vpop.permute.xlu1 %1581  ;;  %v1650_v6 = vld [vmem:[#allocation2 + $0x30] sm:$0xff] }
 0x67d   : > { %v1584_v7 = vpop.permute.xlu0 %1583  ;;  %v2043_v8 = vpack.c.bf16 %v1650_v6, %v1648_v5 }
 0x67e   : > { %v1585_v9 = vsel %vm578_vm11, %v1582_v4, %v1584_v7  ;;  %1589 = vst.msk [vmem:[#allocation2 + $0x68] sm:$0xff] %vm578_vm11, %v1584_v7 }
 0x67f   : > { %2045 = vmatpush1.bf16.msk.msra.mxu1 %vm2357_vm2, %v2043_v8  ;;  %vm2857_vm2 = vcmask 908288  }
 0x680   : > { %v1591_v18 = vpop.permute.xlu1 %1590  ;;  %vm2858_vm11 = vmmov %vm2857_vm2 }
 0x681   : > { %v1593_v10 = vpop.permute.xlu0 %1592  ;;  %v1655_v29 = vld [vmem:[#allocation2 + $0x58] sm:$0xff] }
 0x682   : > { %v1594_v11 = vsel %vm2855_vm14, %v1591_v18, %v1593_v10  ;;  %1598 = vst.msk [vmem:[#allocation2 + $0x78] sm:$0xff] %vm2856_vm15, %v1593_v10  ;;  %v2046_v12 = vpack.c.bf16 %v1655_v29, %v2649_v40 }
 0x683   : > { %v2055_v21 = vpack.c.bf16 %v1594_v11, %v1585_v9 }
 0x684   : > { %2048 = vmatprep.subr.msk.bf16.mxu1 %vm2380_vm6, %v2046_v12  ;;  %v1600_v14 = vpop.permute.xlu1 %1599 }
 0x685   : > { %v1602_v15 = vpop.permute.xlu0 %1601  ;;  %2051 = vmatpush1.bf16.msk.msra.mxu1 %vm2386_vm4, %v2049_v13  ;;  %v1657_v17 = vld [vmem:[#allocation2 + $0x68] sm:$0xff]  ;;  %vm2859_vm4 = vcmask 588800  }
 0x686   : > { %v1603_v32 = vsel %vm2857_vm2, %v1600_v14, %v1602_v15  ;;  %1607 = vst.msk [vmem:[#allocation2 + $0x88] sm:$0xff] %vm2858_vm11, %v1602_v15 }
 0x689   : > { %v1659_v19 = vld [vmem:[#allocation2 + $0x78] sm:$0xff] }
 0x68a   : > { %v2052_v20 = vpack.c.bf16 %v1659_v19, %v1657_v17 }
 0x68c   : > { %2054 = vmatprep.subr.msk.bf16.mxu1 %vm2414_vm5, %v2052_v20 }
 0x68d   : > { %2057 = vmatpush1.bf16.msk.msra.mxu1 %vm2419_vm0, %v2055_v21  ;;  %v1661_v45 = vld [vmem:[#allocation2 + $0x88] sm:$0xff] }
 0x68e   : > { %1927 = vmatprep.subr.msk.mxu1 %vm853_vm3, %v1661_v45 }
 0x691   : > { %1928 = vmatpush1.msk.msra.mxu1 %vm852_vm9, %v1603_v32 }
 0x692   : > { %1929 = vmatmul.mubr.msk.f32.vlgmr.msra.gmra.mrb[4].mxu1 %vm2859_vm4, %v1680_v47 }
 0x695   : > { %v1685_v22 = vpop.permute.xlu1 %1684 }
 0x765   : > { %v1756_v60 = vpop.f32.mrb[4].mxu1 }
 0x766   : > { %v1757_v23 = vadd.f32 %v1756_v60, %v1685_v22  ;;  %v1758_v24 = vpop.f32.mrb[5].mxu1 }
 0x767   : > { %v1759_v56 = vadd.f32 %v1758_v24, %v1685_v22 }
 0x768   : > { %v1761_v0 = vadd.f32 %v2570_v39, %v1757_v23 }
 0x769   : > { %v1762_v25 = vadd.f32 %v2572_v41, %v1759_v56 }
 0x76a   : > { %1763 = vst [vmem:[%s511_s22] sm:$0xff] %v1761_v0 }
 0x76b   : > { %1764 = vst [vmem:[%s511_s22 + $0x8] sm:$0xff] %v1762_v25 }
 0x76c PF: > { %s25_s18 = sadd.s32 1, %s2092_s18  }
 0x76d   : > { %p22_p4 = scmp.ge.s32.totalorder %s25_s18, 4  }
 0x76f   :  { %24 = sbr.rel (!%p22_p4) target bundleno = 4 (0x4), region = 113 }

</bundles_post_ra>
